<compile_context>
chip_gen: v6e
topology: v6e:2x2x1
jax: 0.10.0
libtpu: 0.0.40
codegen_flags: <defaults>
</compile_context>

<pallas_src>
import functools

import jax
import jax.numpy as jnp
from jax.experimental import pallas as pl
from jax.experimental.pallas import tpu as pltpu

LN_EPS = 1e-5
FFN_DIM = 2048                 # nn.TransformerDecoderLayer default dim_feedforward
ACT_DTYPE = jnp.float32        # inter-kernel activation dtype (bf16 = v5e bandwidth opt)


def _detect_vmem_limit():
    """Per-generation scoped-VMEM budget (v7x has only 64 MiB physical per TensorCore)."""
    try:
        kind = jax.devices()[0].device_kind.lower()
    except Exception:
        kind = ""
    if "v7" in kind:
        return 48 * 1024 * 1024
    if "v6" in kind:
        return 96 * 1024 * 1024
    if "v5" in kind or "v4" in kind:
        return 64 * 1024 * 1024
    return 48 * 1024 * 1024    # unknown: be conservative


_VMEM_LIMIT = _detect_vmem_limit()
_TILE_BUDGET = int(_VMEM_LIMIT * 0.6)   # headroom for compiler scratch / vregs


# ----------------------------------------------------------------------------
# Small in-kernel helpers
# ----------------------------------------------------------------------------
def _layer_norm(x, g, b):
    """LayerNorm over the last axis; x/g/b are f32 values (not refs)."""
    mean = jnp.mean(x, axis=-1, keepdims=True)
    var = jnp.mean(jnp.square(x - mean), axis=-1, keepdims=True)
    return (x - mean) * jax.lax.rsqrt(var + LN_EPS) * g + b


def _row_tile(n, fixed_bytes, per_row_bytes):
    """Largest row tile whose estimated VMEM working set fits the per-chip budget.
    Whole slab when small (single grid step); otherwise prefer 1024/512/256 so the
    v6e/v7x 256-wide MXUs and the HBM pipeline stay full (128 only as last resort)."""
    if n <= 1024 and fixed_bytes + n * per_row_bytes <= _TILE_BUDGET:
        return n
    for tm in (1024, 512, 256, 128):
        if tm <= n and n % tm == 0 and fixed_bytes + tm * per_row_bytes <= _TILE_BUDGET:
            return tm
    for tm in (1024, 512, 256, 128):   # ragged final tile handled by Pallas masking
        if tm <= n and fixed_bytes + tm * per_row_bytes <= _TILE_BUDGET:
            return tm
    return 128


def _const_spec(shape):
    """Grid-invariant operand: constant index_map, single-buffered (no wasted VMEM)."""
    return pl.BlockSpec(shape, lambda *_: tuple(0 for _ in shape),
                        pipeline_mode=pl.Buffered(1))


# ----------------------------------------------------------------------------
# Fused (optional-LN) matmul kernel: prenet / postnet
# ----------------------------------------------------------------------------
def _fused_matmul_kernel(*refs, pre_ln, post_ln, activation):
    refs = list(refs)
    o_ref = refs.pop()
    it = iter(refs)
    x_ref = next(it)
    w_ref = next(it)
    b_ref = next(it)
    gi_ref = next(it) if pre_ln else None
    bi_ref = next(it) if pre_ln else None
    go_ref = next(it) if post_ln else None
    bo_ref = next(it) if post_ln else None

    x = x_ref[...].astype(jnp.float32)
    if pre_ln:
        x = _layer_norm(x, gi_ref[...].astype(jnp.float32), bi_ref[...].astype(jnp.float32))
    y = jnp.dot(x.astype(w_ref.dtype), w_ref[...], preferred_element_type=jnp.float32)
    y = y + b_ref[...].astype(jnp.float32)
    if activation == "relu":
        y = jnp.maximum(y, 0.0)
    if post_ln:
        y = _layer_norm(y, go_ref[...].astype(jnp.float32), bo_ref[...].astype(jnp.float32))
    o_ref[...] = y.astype(o_ref.dtype)


def fused_linear(x, w, b, *, pre_ln=None, post_ln=None, activation=None):
    """x: (N, Din), w: (Din, Dout), b: (Dout,).  pre_ln/post_ln: optional (gamma, beta)."""
    N, Din = x.shape
    Dout = w.shape[1]
    act_bytes = x.dtype.itemsize
    fixed = Din * Dout * w.dtype.itemsize                       # weight slab (single-buffered)
    per_row = (2 * Din + 2 * Dout) * act_bytes + Dout * 4       # dbl-buffered tiles + f32 temp
    tm = _row_tile(N, fixed, per_row)

    arrays = [x, w, b.reshape(1, Dout)]
    specs = [
        pl.BlockSpec((tm, Din), lambda i: (i, 0)),
        _const_spec((Din, Dout)),
        _const_spec((1, Dout)),
    ]
    if pre_ln is not None:
        g, bt = pre_ln
        arrays += [g.reshape(1, Din), bt.reshape(1, Din)]
        specs += [_const_spec((1, Din)), _const_spec((1, Din))]
    if post_ln is not None:
        g, bt = post_ln
        arrays += [g.reshape(1, Dout), bt.reshape(1, Dout)]
        specs += [_const_spec((1, Dout)), _const_spec((1, Dout))]

    flops = int(2 * N * Din * Dout)
    bytes_accessed = int(N * Din * act_bytes + Din * Dout * w.dtype.itemsize
                         + N * Dout * act_bytes)
    kernel = functools.partial(
        _fused_matmul_kernel,
        pre_ln=pre_ln is not None, post_ln=post_ln is not None, activation=activation)
    return pl.pallas_call(
        kernel,
        grid=(pl.cdiv(N, tm),),
        in_specs=specs,
        out_specs=pl.BlockSpec((tm, Dout), lambda i: (i, 0)),
        out_shape=jax.ShapeDtypeStruct((N, Dout), x.dtype),
        compiler_params=pltpu.CompilerParams(
            dimension_semantics=("parallel",), vmem_limit_bytes=_VMEM_LIMIT),
        cost_estimate=pl.CostEstimate(
            flops=flops, transcendentals=0, bytes_accessed=bytes_accessed),
    )(*arrays)


# ----------------------------------------------------------------------------
# Fused attention block: per-(batch, head) grid step.
#   QKV proj + SDPA + per-head out-proj accumulation; residual + LayerNorm at last head.
# ----------------------------------------------------------------------------
def _attn_block_kernel(*refs, is_self):
    refs = list(refs)
    acc_ref = refs.pop()            # (S, D) f32 scratch — sum of per-head out-proj slices
    o_ref = refs.pop()
    it = iter(refs)
    x_ref = next(it)                            # (1, S, D): query source & residual
    mem_ref = x_ref if is_self else next(it)    # (1, S, D): key/value source
    wqkv_ref = next(it)                         # (1, D, 3*hd): [Wq_h | Wk_h | Wv_h]
    bqkv_ref = next(it)                         # (1, 1, 3*hd)
    wo_ref = next(it)                           # (1, hd, D): this head's out-proj rows
    bo_ref = next(it)                           # (1, D)
    g_ref = next(it)                            # (1, D)
    beta_ref = next(it)                         # (1, D)

    h = pl.program_id(1)
    hd = wqkv_ref.shape[2] // 3
    mdt = wqkv_ref.dtype            # MXU input dtype (bf16)

    @pl.when(h == 0)
    def _():
        acc_ref[...] = jnp.zeros_like(acc_ref)

    x = x_ref[0]
    wqkv = wqkv_ref[0]
    bqkv = bqkv_ref[0].astype(jnp.float32)      # (1, 3*hd)

    if is_self:
        # one MXU pass over x for Q, K and V of this head
        qkv = jnp.dot(x.astype(mdt), wqkv, preferred_element_type=jnp.float32) + bqkv
        q, k, v = qkv[:, :hd], qkv[:, hd:2 * hd], qkv[:, 2 * hd:]
    else:
        mem = mem_ref[0]
        q = jnp.dot(x.astype(mdt), wqkv[:, :hd],
                    preferred_element_type=jnp.float32) + bqkv[:, :hd]
        kv = jnp.dot(mem.astype(mdt), wqkv[:, hd:],
                     preferred_element_type=jnp.float32) + bqkv[:, hd:]
        k, v = kv[:, :hd], kv[:, hd:]

    # 1/sqrt(hd) was folded into the Q weight/bias columns at prepare time.
    s = jax.lax.dot_general(q.astype(mdt), k.astype(mdt),
                            (((1,), (1,)), ((), ())),
                            preferred_element_type=jnp.float32)        # (S, S), no transpose
    s = s - jnp.max(s, axis=-1, keepdims=True)
    p = jnp.exp(s)
    p = p * pl.reciprocal(jnp.sum(p, axis=-1, keepdims=True), approx=True)   # EUP, ~free

    ctx = jnp.dot(p.astype(mdt), v.astype(mdt), preferred_element_type=jnp.float32)  # (S, hd)
    acc_ref[...] += jnp.dot(ctx.astype(mdt), wo_ref[0], preferred_element_type=jnp.float32)

    @pl.when(h == pl.num_programs(1) - 1)
    def _():
        out = acc_ref[...] + bo_ref[...].astype(jnp.float32) + x_ref[0].astype(jnp.float32)
        out = _layer_norm(out, g_ref[...].astype(jnp.float32),
                          beta_ref[...].astype(jnp.float32))
        o_ref[0] = out.astype(o_ref.dtype)


def attention_block(x, mem, p, gamma, beta, heads, *, is_self):
    """x, mem: (B, S, D).  Returns LayerNorm(x + MHA(x, mem, mem)). Grid = (B, heads)."""
    B, S, D = x.shape
    hd = D // heads
    per_step = 2 * S * D * 3 * hd + 4 * S * S * hd + 2 * S * hd * D
    flops = int(B * heads * per_step)
    bytes_accessed = int((2 if is_self else 3) * B * S * D * x.dtype.itemsize
                         + B * (p["w_qkv"].size + p["w_out"].size) * p["w_qkv"].dtype.itemsize)

    act_spec = pl.BlockSpec((1, S, D), lambda b, h: (b, 0, 0))
    arrays = [x] + ([] if is_self else [mem]) + [
        p["w_qkv"], p["b_qkv"], p["w_out"], p["b_out"],
        gamma.reshape(1, D), beta.reshape(1, D)]
    in_specs = [act_spec] + ([] if is_self else [act_spec]) + [
        pl.BlockSpec((1, D, 3 * hd), lambda b, h: (h, 0, 0)),
        pl.BlockSpec((1, 1, 3 * hd), lambda b, h: (h, 0, 0)),
        pl.BlockSpec((1, hd, D), lambda b, h: (h, 0, 0)),
        _const_spec((1, D)),   # out-proj bias
        _const_spec((1, D)),   # gamma
        _const_spec((1, D)),   # beta
    ]
    return pl.pallas_call(
        functools.partial(_attn_block_kernel, is_self=is_self),
        grid=(B, heads),
        in_specs=in_specs,
        out_specs=pl.BlockSpec((1, S, D), lambda b, h: (b, 0, 0)),
        out_shape=jax.ShapeDtypeStruct((B, S, D), x.dtype),
        scratch_shapes=[pltpu.VMEM((S, D), jnp.float32)],
        compiler_params=pltpu.CompilerParams(
            dimension_semantics=("parallel", "arbitrary"), vmem_limit_bytes=_VMEM_LIMIT),
        cost_estimate=pl.CostEstimate(
            flops=flops, transcendentals=int(B * heads * S * S),
            bytes_accessed=bytes_accessed),
    )(*arrays)


# ----------------------------------------------------------------------------
# Fused FFN block kernel: linear1 + ReLU + linear2 + residual + LayerNorm
# ----------------------------------------------------------------------------
def _ffn_block_kernel(x_ref, w1_ref, b1_ref, w2_ref, b2_ref, g_ref, beta_ref, o_ref):
    x = x_ref[...].astype(jnp.float32)
    mdt = w1_ref.dtype
    h = jnp.dot(x.astype(mdt), w1_ref[...], preferred_element_type=jnp.float32)
    h = jnp.maximum(h + b1_ref[...].astype(jnp.float32), 0.0)
    y = jnp.dot(h.astype(mdt), w2_ref[...], preferred_element_type=jnp.float32)
    y = y + b2_ref[...].astype(jnp.float32) + x
    y = _layer_norm(y, g_ref[...].astype(jnp.float32), beta_ref[...].astype(jnp.float32))
    o_ref[...] = y.astype(o_ref.dtype)


def ffn_block(x, w1, b1, w2, b2, gamma, beta):
    """x: (N, D).  Returns LayerNorm(x + linear2(relu(linear1(x))))."""
    N, D = x.shape
    F = w1.shape[1]
    act_bytes = x.dtype.itemsize
    fixed = 2 * D * F * w1.dtype.itemsize                 # both weight slabs, single-buffered
    per_row = 4 * D * act_bytes + (F + 2 * D) * 4         # dbl-buffered x/out + f32 hidden/temps
    tm = _row_tile(N, fixed, per_row)
    flops = int(4 * N * D * F)
    bytes_accessed = int(2 * N * D * act_bytes + 2 * D * F * w1.dtype.itemsize)
    return pl.pallas_call(
        _ffn_block_kernel,
        grid=(pl.cdiv(N, tm),),
        in_specs=[
            pl.BlockSpec((tm, D), lambda i: (i, 0)),
            _const_spec((D, F)),
            _const_spec((1, F)),
            _const_spec((F, D)),
            _const_spec((1, D)),
            _const_spec((1, D)),
            _const_spec((1, D)),
        ],
        out_specs=pl.BlockSpec((tm, D), lambda i: (i, 0)),
        out_shape=jax.ShapeDtypeStruct((N, D), x.dtype),
        compiler_params=pltpu.CompilerParams(
            dimension_semantics=("parallel",), vmem_limit_bytes=_VMEM_LIMIT),
        cost_estimate=pl.CostEstimate(
            flops=flops, transcendentals=0, bytes_accessed=bytes_accessed),
    )(x, w1, b1.reshape(1, F), w2, b2.reshape(1, D), gamma.reshape(1, D), beta.reshape(1, D))


# ----------------------------------------------------------------------------
# Model composition
# ----------------------------------------------------------------------------
def decoder_layer(x, p, heads):
    """x: (B, S, D). Post-norm nn.TransformerDecoderLayer called as layer(x, x)."""
    B, S, D = x.shape
    memory = x  # second argument of layer(x, x): the layer's original input
    x = attention_block(x, None, p["self_attn"], p["norm1_g"], p["norm1_b"], heads,
                        is_self=True)
    x = attention_block(x, memory, p["cross_attn"], p["norm2_g"], p["norm2_b"], heads,
                        is_self=False)
    rows = ffn_block(x.reshape(B * S, D), p["linear1_w"], p["linear1_b"],
                     p["linear2_w"], p["linear2_b"], p["norm3_g"], p["norm3_b"])
    return rows.reshape(B, S, D)


def transformer_forward(x, params, heads):
    """x: (S, B, embd_dim) -> (S, B, embd_dim)."""
    S, B, E = x.shape
    # Cheap embd_dim-wide relayout to batch-major BEFORE prenet (D/E times less traffic
    # than transposing the dim-wide activations after it).
    xb = jnp.transpose(x, (1, 0, 2)).reshape(B * S, E)
    # prenet: fused LayerNorm(E) -> Linear(E, D)
    h = fused_linear(xb, params["pre_lin_w"], params["pre_lin_b"],
                     pre_ln=(params["pre_ln_g"], params["pre_ln_b"]))
    D = h.shape[-1]
    h = h.reshape(B, S, D).astype(ACT_DTYPE)
    for lp in params["layers"]:
        h = decoder_layer(h, lp, heads)
    # postnet: fused Linear(D, E) -> LayerNorm(E), still in (B*S) row order
    o = fused_linear(h.reshape(B * S, D), params["post_lin_w"], params["post_lin_b"],
                     post_ln=(params["post_ln_g"], params["post_ln_b"]))
    # cheap embd_dim-wide relayout back to (S, B, E)
    return jnp.transpose(o.reshape(B, S, E), (1, 0, 2)).astype(x.dtype)


# ----------------------------------------------------------------------------
# Parameter init (PyTorch layout) + one-time preparation (transpose / fold / cast)
# ----------------------------------------------------------------------------
def init_params(key, embd_dim, dim, n_layers, ffn_dim=FFN_DIM):
    keys = iter(jax.random.split(key, 4 + 8 * n_layers))

    def W(shape):
        return 0.02 * jax.random.normal(next(keys), shape, jnp.float32)

    def ones(n):
        return jnp.ones((n,), jnp.float32)

    def zeros(n):
        return jnp.zeros((n,), jnp.float32)

    def mha_params(d):
        return {
            "in_proj_weight": W((3 * d, d)),
            "in_proj_bias": zeros(3 * d),
            "out_proj_weight": W((d, d)),
            "out_proj_bias": zeros(d),
        }

    params = {
        "pre_ln_g": ones(embd_dim), "pre_ln_b": zeros(embd_dim),
        "pre_lin_w": W((dim, embd_dim)), "pre_lin_b": zeros(dim),
        "post_lin_w": W((embd_dim, dim)), "post_lin_b": zeros(embd_dim),
        "post_ln_g": ones(embd_dim), "post_ln_b": zeros(embd_dim),
        "layers": [],
    }
    for _ in range(n_layers):
        params["layers"].append({
            "self_attn": mha_params(dim),
            "cross_attn": mha_params(dim),
            "linear1_w": W((ffn_dim, dim)), "linear1_b": zeros(ffn_dim),
            "linear2_w": W((dim, ffn_dim)), "linear2_b": zeros(dim),
            "norm1_g": ones(dim), "norm1_b": zeros(dim),
            "norm2_g": ones(dim), "norm2_b": zeros(dim),
            "norm3_g": ones(dim), "norm3_b": zeros(dim),
        })
    return params


def _prep_mha(p, heads, matmul_dtype):
    """PyTorch fused in_proj (3D, D) -> per-head (H, D, 3*hd) with [Wq_h | Wk_h | Wv_h]
    columns; out_proj (D, D) -> per-head (H, hd, D) row slabs; 1/sqrt(hd) folded into Q."""
    d = p["out_proj_weight"].shape[0]
    hd = d // heads
    scale = 1.0 / float(hd) ** 0.5
    wq = p["in_proj_weight"][:d].T * scale           # (D_in, D_out), scale pre-folded
    wk = p["in_proj_weight"][d:2 * d].T
    wv = p["in_proj_weight"][2 * d:].T
    bq = p["in_proj_bias"][:d] * scale
    bk = p["in_proj_bias"][d:2 * d]
    bv = p["in_proj_bias"][2 * d:]
    w_qkv = jnp.concatenate([wq.reshape(d, heads, hd),
                             wk.reshape(d, heads, hd),
                             wv.reshape(d, heads, hd)], axis=-1)    # (D, H, 3*hd)
    w_qkv = jnp.transpose(w_qkv, (1, 0, 2))                         # (H, D, 3*hd)
    b_qkv = jnp.concatenate([bq.reshape(heads, 1, hd),
                             bk.reshape(heads, 1, hd),
                             bv.reshape(heads, 1, hd)], axis=-1)    # (H, 1, 3*hd)
    w_out = p["out_proj_weight"].T.reshape(heads, hd, d)            # (H, hd, D)
    return {
        "w_qkv": w_qkv.astype(matmul_dtype),
        "b_qkv": b_qkv.astype(jnp.float32),
        "w_out": w_out.astype(matmul_dtype),
        "b_out": p["out_proj_bias"].reshape(1, d).astype(jnp.float32),
    }


def prepare_params(params, heads, matmul_dtype=jnp.bfloat16):
    """One-time: transpose PyTorch (out,in) weights to (in,out), build per-head attention
    weight slabs with the softmax scale folded in, and cast matmul weights to the MXU
    input dtype (biases / LayerNorm params stay f32)."""
    def wt(w):
        return jnp.asarray(w.T, dtype=matmul_dtype)

    out = {
        "pre_ln_g": params["pre_ln_g"], "pre_ln_b": params["pre_ln_b"],
        "pre_lin_w": wt(params["pre_lin_w"]), "pre_lin_b": params["pre_lin_b"],
        "post_lin_w": wt(params["post_lin_w"]), "post_lin_b": params["post_lin_b"],
        "post_ln_g": params["post_ln_g"], "post_ln_b": params["post_ln_b"],
        "layers": [],
    }
    for lp in params["layers"]:
        out["layers"].append({
            "self_attn": _prep_mha(lp["self_attn"], heads, matmul_dtype),
            "cross_attn": _prep_mha(lp["cross_attn"], heads, matmul_dtype),
            "linear1_w": wt(lp["linear1_w"]), "linear1_b": lp["linear1_b"],
            "linear2_w": wt(lp["linear2_w"]), "linear2_b": lp["linear2_b"],
            "norm1_g": lp["norm1_g"], "norm1_b": lp["norm1_b"],
            "norm2_g": lp["norm2_g"], "norm2_b": lp["norm2_b"],
            "norm3_g": lp["norm3_g"], "norm3_b": lp["norm3_b"],
        })
    return out


if __name__ == "__main__":
    embd_dim, dim, layers, heads = 32, 64, 2, 4
    seq, batch = 8, 2

    key = jax.random.PRNGKey(0)
    kx, kp = jax.random.split(key)
    x = jax.random.normal(kx, (seq, batch, embd_dim), jnp.float32)
    raw_params = init_params(kp, embd_dim, dim, layers)
    params = prepare_params(raw_params, heads, matmul_dtype=jnp.bfloat16)

    fwd = jax.jit(functools.partial(transformer_forward, heads=heads))
    out = jax.block_until_ready(fwd(x, params))

    assert out.shape == (seq, batch, embd_dim), out.shape
    assert bool(jnp.all(jnp.isfinite(out)))
    print("KERNEL_OK")
</pallas_src>

<mosaic_0001>
module attributes {stable_mosaic.version = 11 : i64} {
  func.func @_fused_matmul_kernel(%arg0: i32, %arg1: memref<16x32xf32, #tpu.memory_space<vmem>>, %arg2: memref<32x64xbf16, #tpu.memory_space<vmem>>, %arg3: memref<1x64xf32, #tpu.memory_space<vmem>>, %arg4: memref<1x32xf32, #tpu.memory_space<vmem>>, %arg5: memref<1x32xf32, #tpu.memory_space<vmem>>, %arg6: memref<16x64xf32, #tpu.memory_space<vmem>>) attributes {dimension_semantics = [#tpu.dimension_semantics<parallel>], iteration_bounds = array<i64: 1>, scalar_prefetch = 0 : i64, scratch_operands = 0 : i64, tpu.core_type = #tpu.core_type<tc>, window_params = [{transform_indices = @transform_0, window_bounds = array<i64: 16, 32>}, {pipeline_mode = #tpu.pipeline_mode<synchronous>, transform_indices = @transform_1, window_bounds = array<i64: 32, 64>}, {pipeline_mode = #tpu.pipeline_mode<synchronous>, transform_indices = @transform_2, window_bounds = array<i64: 1, 64>}, {pipeline_mode = #tpu.pipeline_mode<synchronous>, transform_indices = @transform_3, window_bounds = array<i64: 1, 32>}, {pipeline_mode = #tpu.pipeline_mode<synchronous>, transform_indices = @transform_4, window_bounds = array<i64: 1, 32>}, {transform_indices = @transform_5, window_bounds = array<i64: 16, 64>}]} {
    %c0 = arith.constant 0 : index
    %c0_0 = arith.constant 0 : index
    %0 = vector.load %arg1[%c0, %c0_0] : memref<16x32xf32, #tpu.memory_space<vmem>>, vector<16x32xf32>
    %c0_1 = arith.constant 0 : index
    %c0_2 = arith.constant 0 : index
    %1 = vector.load %arg4[%c0_1, %c0_2] : memref<1x32xf32, #tpu.memory_space<vmem>>, vector<1x32xf32>
    %c0_3 = arith.constant 0 : index
    %c0_4 = arith.constant 0 : index
    %2 = vector.load %arg5[%c0_3, %c0_4] : memref<1x32xf32, #tpu.memory_space<vmem>>, vector<1x32xf32>
    %cst = arith.constant dense<0.000000e+00> : vector<16xf32>
    %3 = vector.multi_reduction <add>, %0, %cst [1] : vector<16x32xf32> to vector<16xf32>
    %4 = vector.shape_cast %3 : vector<16xf32> to vector<16x1xf32>
    %cst_5 = arith.constant 3.200000e+01 : f32
    %5 = vector.broadcast %cst_5 : f32 to vector<16x1xf32>
    %6 = arith.divf %4, %5 : vector<16x1xf32>
    %7 = vector.broadcast %6 : vector<16x1xf32> to vector<16x32xf32>
    %8 = arith.subf %0, %7 : vector<16x32xf32>
    %9 = arith.mulf %8, %8 : vector<16x32xf32>
    %cst_6 = arith.constant dense<0.000000e+00> : vector<16xf32>
    %10 = vector.multi_reduction <add>, %9, %cst_6 [1] : vector<16x32xf32> to vector<16xf32>
    %11 = vector.shape_cast %10 : vector<16xf32> to vector<16x1xf32>
    %cst_7 = arith.constant 3.200000e+01 : f32
    %12 = vector.broadcast %cst_7 : f32 to vector<16x1xf32>
    %13 = arith.divf %11, %12 : vector<16x1xf32>
    %14 = vector.broadcast %6 : vector<16x1xf32> to vector<16x32xf32>
    %15 = arith.subf %0, %14 : vector<16x32xf32>
    %cst_8 = arith.constant 9.99999974E-6 : f32
    %16 = vector.broadcast %cst_8 : f32 to vector<16x1xf32>
    %17 = arith.addf %13, %16 : vector<16x1xf32>
    %18 = math.rsqrt %17 : vector<16x1xf32>
    %19 = vector.broadcast %18 : vector<16x1xf32> to vector<16x32xf32>
    %20 = arith.mulf %15, %19 : vector<16x32xf32>
    %21 = vector.broadcast %1 : vector<1x32xf32> to vector<16x32xf32>
    %22 = arith.mulf %20, %21 : vector<16x32xf32>
    %23 = vector.broadcast %2 : vector<1x32xf32> to vector<16x32xf32>
    %24 = arith.addf %22, %23 : vector<16x32xf32>
    %25 = arith.truncf %24 : vector<16x32xf32> to vector<16x32xbf16>
    %c0_9 = arith.constant 0 : index
    %c0_10 = arith.constant 0 : index
    %26 = vector.load %arg2[%c0_9, %c0_10] : memref<32x64xbf16, #tpu.memory_space<vmem>>, vector<32x64xbf16>
    %cst_11 = arith.constant dense<0.000000e+00> : vector<16x64xf32>
    %27 = tpu.matmul %25, %26, %cst_11 {dimension_numbers = #tpu.dot_dimension_numbers<[1], [0], [0], [1], [0, 0, 1, 1], [], []>} : vector<16x32xbf16>, vector<32x64xbf16>, vector<16x64xf32> -> vector<16x64xf32>
    %c0_12 = arith.constant 0 : index
    %c0_13 = arith.constant 0 : index
    %28 = vector.load %arg3[%c0_12, %c0_13] : memref<1x64xf32, #tpu.memory_space<vmem>>, vector<1x64xf32>
    %29 = vector.broadcast %28 : vector<1x64xf32> to vector<16x64xf32>
    %30 = arith.addf %27, %29 : vector<16x64xf32>
    %c0_14 = arith.constant 0 : index
    %c0_15 = arith.constant 0 : index
    %31 = vector.load %arg6[%c0_14, %c0_15] : memref<16x64xf32, #tpu.memory_space<vmem>>, vector<16x64xf32>
    tpu.vector_store %arg6[%c0_14, %c0_15], %30 {strides = array<i32>} : memref<16x64xf32, #tpu.memory_space<vmem>>, vector<16x64xf32>,
    return
  }
  func.func @transform_0(%arg0: i32) -> (i32, i32) {
    %c0_i32 = arith.constant 0 : i32
    %c0_i32_0 = arith.constant 0 : i32
    return %arg0, %c0_i32 : i32, i32
  }
  func.func @transform_1(%arg0: i32) -> (i32, i32) {
    %c0_i32 = arith.constant 0 : i32
    %c0_i32_0 = arith.constant 0 : i32
    %c0_i32_1 = arith.constant 0 : i32
    return %c0_i32, %c0_i32_0 : i32, i32
  }
  func.func @transform_2(%arg0: i32) -> (i32, i32) {
    %c0_i32 = arith.constant 0 : i32
    %c0_i32_0 = arith.constant 0 : i32
    %c0_i32_1 = arith.constant 0 : i32
    return %c0_i32, %c0_i32_0 : i32, i32
  }
  func.func @transform_3(%arg0: i32) -> (i32, i32) {
    %c0_i32 = arith.constant 0 : i32
    %c0_i32_0 = arith.constant 0 : i32
    %c0_i32_1 = arith.constant 0 : i32
    return %c0_i32, %c0_i32_0 : i32, i32
  }
  func.func @transform_4(%arg0: i32) -> (i32, i32) {
    %c0_i32 = arith.constant 0 : i32
    %c0_i32_0 = arith.constant 0 : i32
    %c0_i32_1 = arith.constant 0 : i32
    return %c0_i32, %c0_i32_0 : i32, i32
  }
  func.func @transform_5(%arg0: i32) -> (i32, i32) {
    %c0_i32 = arith.constant 0 : i32
    %c0_i32_0 = arith.constant 0 : i32
    return %arg0, %c0_i32 : i32, i32
  }
}

module attributes {stable_mosaic.version = 11 : i64} {
  func.func @_attn_block_kernel(%arg0: i32, %arg1: i32, %arg2: memref<1x8x64xf32, #tpu.memory_space<vmem>>, %arg3: memref<1x64x48xbf16, #tpu.memory_space<vmem>>, %arg4: memref<1x1x48xf32, #tpu.memory_space<vmem>>, %arg5: memref<1x16x64xbf16, #tpu.memory_space<vmem>>, %arg6: memref<1x64xf32, #tpu.memory_space<vmem>>, %arg7: memref<1x64xf32, #tpu.memory_space<vmem>>, %arg8: memref<1x64xf32, #tpu.memory_space<vmem>>, %arg9: memref<1x8x64xf32, #tpu.memory_space<vmem>>, %arg10: memref<8x64xf32, #tpu.memory_space<vmem>>) attributes {dimension_semantics = [#tpu.dimension_semantics<parallel>, #tpu.dimension_semantics<arbitrary>], iteration_bounds = array<i64: 2, 4>, scalar_prefetch = 0 : i64, scratch_operands = 1 : i64, tpu.core_type = #tpu.core_type<tc>, window_params = [{transform_indices = @transform_0, window_bounds = array<i64: 1, 8, 64>}, {transform_indices = @transform_1, window_bounds = array<i64: 1, 64, 48>}, {transform_indices = @transform_2, window_bounds = array<i64: 1, 1, 48>}, {transform_indices = @transform_3, window_bounds = array<i64: 1, 16, 64>}, {pipeline_mode = #tpu.pipeline_mode<synchronous>, transform_indices = @transform_4, window_bounds = array<i64: 1, 64>}, {pipeline_mode = #tpu.pipeline_mode<synchronous>, transform_indices = @transform_5, window_bounds = array<i64: 1, 64>}, {pipeline_mode = #tpu.pipeline_mode<synchronous>, transform_indices = @transform_6, window_bounds = array<i64: 1, 64>}, {transform_indices = @transform_7, window_bounds = array<i64: 1, 8, 64>}]} {
    %c0_i32 = arith.constant 0 : i32
    %0 = arith.cmpi eq, %arg1, %c0_i32 : i32
    %1 = arith.extui %0 : i1 to i32
    %c0_i32_0 = arith.constant 0 : i32
    %2 = arith.cmpi ne, %1, %c0_i32_0 : i32
    scf.if %2 {
      %cst_22 = arith.constant 0.000000e+00 : f32
      %42 = vector.broadcast %cst_22 : f32 to vector<8x64xf32>
      %c0_23 = arith.constant 0 : index
      %c0_24 = arith.constant 0 : index
      %43 = vector.load %arg10[%c0_23, %c0_24] : memref<8x64xf32, #tpu.memory_space<vmem>>, vector<8x64xf32>
      tpu.vector_store %arg10[%c0_23, %c0_24], %42 {strides = array<i32>} : memref<8x64xf32, #tpu.memory_space<vmem>>, vector<8x64xf32>,
    } else {
    }
    %c0 = arith.constant 0 : index
    %c0_1 = arith.constant 0 : index
    %c0_2 = arith.constant 0 : index
    %3 = vector.load %arg2[%c0, %c0_1, %c0_2] : memref<1x8x64xf32, #tpu.memory_space<vmem>>, vector<1x8x64xf32>
    %4 = vector.shape_cast %3 : vector<1x8x64xf32> to vector<8x64xf32>
    %c0_3 = arith.constant 0 : index
    %c0_4 = arith.constant 0 : index
    %c0_5 = arith.constant 0 : index
    %5 = vector.load %arg3[%c0_3, %c0_4, %c0_5] : memref<1x64x48xbf16, #tpu.memory_space<vmem>>, vector<1x64x48xbf16>
    %6 = vector.shape_cast %5 : vector<1x64x48xbf16> to vector<64x48xbf16>
    %c0_6 = arith.constant 0 : index
    %c0_7 = arith.constant 0 : index
    %c0_8 = arith.constant 0 : index
    %7 = vector.load %arg4[%c0_6, %c0_7, %c0_8] : memref<1x1x48xf32, #tpu.memory_space<vmem>>, vector<1x1x48xf32>
    %8 = vector.shape_cast %7 : vector<1x1x48xf32> to vector<1x48xf32>
    %9 = arith.truncf %4 : vector<8x64xf32> to vector<8x64xbf16>
    %cst = arith.constant dense<0.000000e+00> : vector<8x48xf32>
    %10 = tpu.matmul %9, %6, %cst {dimension_numbers = #tpu.dot_dimension_numbers<[1], [0], [0], [1], [0, 0, 1, 1], [], []>} : vector<8x64xbf16>, vector<64x48xbf16>, vector<8x48xf32> -> vector<8x48xf32>
    %11 = vector.broadcast %8 : vector<1x48xf32> to vector<8x48xf32>
    %12 = arith.addf %10, %11 : vector<8x48xf32>
    %13 = vector.extract_strided_slice %12 {offsets = [0, 0], sizes = [8, 16], strides = [1, 1]} : vector<8x48xf32> to vector<8x16xf32>
    %14 = vector.extract_strided_slice %12 {offsets = [0, 16], sizes = [8, 16], strides = [1, 1]} : vector<8x48xf32> to vector<8x16xf32>
    %15 = vector.extract_strided_slice %12 {offsets = [0, 32], sizes = [8, 16], strides = [1, 1]} : vector<8x48xf32> to vector<8x16xf32>
    %16 = arith.truncf %13 : vector<8x16xf32> to vector<8x16xbf16>
    %17 = arith.truncf %14 : vector<8x16xf32> to vector<8x16xbf16>
    %cst_9 = arith.constant dense<0.000000e+00> : vector<8x8xf32>
    %18 = tpu.matmul %16, %17, %cst_9 {dimension_numbers = #tpu.dot_dimension_numbers<[1], [1], [0], [0], [0, 0, 1, 0], [], []>} : vector<8x16xbf16>, vector<8x16xbf16>, vector<8x8xf32> -> vector<8x8xf32>
    %cst_10 = arith.constant dense<0xFF800000> : vector<8xf32>
    %19 = vector.multi_reduction <maximumf>, %18, %cst_10 [1] : vector<8x8xf32> to vector<8xf32>
    %20 = vector.shape_cast %19 : vector<8xf32> to vector<8x1xf32>
    %21 = vector.broadcast %20 : vector<8x1xf32> to vector<8x8xf32>
    %22 = arith.subf %18, %21 : vector<8x8xf32>
    %23 = math.exp %22 : vector<8x8xf32>
    %cst_11 = arith.constant dense<0.000000e+00> : vector<8xf32>
    %24 = vector.multi_reduction <add>, %23, %cst_11 [1] : vector<8x8xf32> to vector<8xf32>
    %25 = vector.shape_cast %24 : vector<8xf32> to vector<8x1xf32>
    %26 = tpu.reciprocal %25 {approx = true} : vector<8x1xf32> -> vector<8x1xf32>
    %27 = vector.broadcast %26 : vector<8x1xf32> to vector<8x8xf32>
    %28 = arith.mulf %23, %27 : vector<8x8xf32>
    %29 = arith.truncf %28 : vector<8x8xf32> to vector<8x8xbf16>
    %30 = arith.truncf %15 : vector<8x16xf32> to vector<8x16xbf16>
    %cst_12 = arith.constant dense<0.000000e+00> : vector<8x16xf32>
    %31 = tpu.matmul %29, %30, %cst_12 {dimension_numbers = #tpu.dot_dimension_numbers<[1], [0], [0], [1], [0, 0, 1, 1], [], []>} : vector<8x8xbf16>, vector<8x16xbf16>, vector<8x16xf32> -> vector<8x16xf32>
    %c0_13 = arith.constant 0 : index
    %c0_14 = arith.constant 0 : index
    %32 = vector.load %arg10[%c0_13, %c0_14] : memref<8x64xf32, #tpu.memory_space<vmem>>, vector<8x64xf32>
    %33 = arith.truncf %31 : vector<8x16xf32> to vector<8x16xbf16>
    %c0_15 = arith.constant 0 : index
    %c0_16 = arith.constant 0 : index
    %c0_17 = arith.constant 0 : index
    %34 = vector.load %arg5[%c0_15, %c0_16, %c0_17] : memref<1x16x64xbf16, #tpu.memory_space<vmem>>, vector<1x16x64xbf16>
    %35 = vector.shape_cast %34 : vector<1x16x64xbf16> to vector<16x64xbf16>
    %cst_18 = arith.constant dense<0.000000e+00> : vector<8x64xf32>
    %36 = tpu.matmul %33, %35, %cst_18 {dimension_numbers = #tpu.dot_dimension_numbers<[1], [0], [0], [1], [0, 0, 1, 1], [], []>} : vector<8x16xbf16>, vector<16x64xbf16>, vector<8x64xf32> -> vector<8x64xf32>
    %37 = arith.addf %32, %36 : vector<8x64xf32>
    %c0_19 = arith.constant 0 : index
    %c0_20 = arith.constant 0 : index
    %38 = vector.load %arg10[%c0_19, %c0_20] : memref<8x64xf32, #tpu.memory_space<vmem>>, vector<8x64xf32>
    tpu.vector_store %arg10[%c0_19, %c0_20], %37 {strides = array<i32>} : memref<8x64xf32, #tpu.memory_space<vmem>>, vector<8x64xf32>,
    %c3_i32 = arith.constant 3 : i32
    %39 = arith.cmpi eq, %arg1, %c3_i32 : i32
    %40 = arith.extui %39 : i1 to i32
    %c0_i32_21 = arith.constant 0 : i32
    %41 = arith.cmpi ne, %40, %c0_i32_21 : i32
    scf.if %41 {
      %c0_22 = arith.constant 0 : index
      %c0_23 = arith.constant 0 : index
      %42 = vector.load %arg10[%c0_22, %c0_23] : memref<8x64xf32, #tpu.memory_space<vmem>>, vector<8x64xf32>
      %c0_24 = arith.constant 0 : index
      %c0_25 = arith.constant 0 : index
      %43 = vector.load %arg6[%c0_24, %c0_25] : memref<1x64xf32, #tpu.memory_space<vmem>>, vector<1x64xf32>
      %44 = vector.broadcast %43 : vector<1x64xf32> to vector<8x64xf32>
      %45 = arith.addf %42, %44 : vector<8x64xf32>
      %c0_26 = arith.constant 0 : index
      %c0_27 = arith.constant 0 : index
      %c0_28 = arith.constant 0 : index
      %46 = vector.load %arg2[%c0_26, %c0_27, %c0_28] : memref<1x8x64xf32, #tpu.memory_space<vmem>>, vector<1x8x64xf32>
      %47 = vector.shape_cast %46 : vector<1x8x64xf32> to vector<8x64xf32>
      %48 = arith.addf %45, %47 : vector<8x64xf32>
      %c0_29 = arith.constant 0 : index
      %c0_30 = arith.constant 0 : index
      %49 = vector.load %arg7[%c0_29, %c0_30] : memref<1x64xf32, #tpu.memory_space<vmem>>, vector<1x64xf32>
      %c0_31 = arith.constant 0 : index
      %c0_32 = arith.constant 0 : index
      %50 = vector.load %arg8[%c0_31, %c0_32] : memref<1x64xf32, #tpu.memory_space<vmem>>, vector<1x64xf32>
      %cst_33 = arith.constant dense<0.000000e+00> : vector<8xf32>
      %51 = vector.multi_reduction <add>, %48, %cst_33 [1] : vector<8x64xf32> to vector<8xf32>
      %52 = vector.shape_cast %51 : vector<8xf32> to vector<8x1xf32>
      %cst_34 = arith.constant 6.400000e+01 : f32
      %53 = vector.broadcast %cst_34 : f32 to vector<8x1xf32>
      %54 = arith.divf %52, %53 : vector<8x1xf32>
      %55 = vector.broadcast %54 : vector<8x1xf32> to vector<8x64xf32>
      %56 = arith.subf %48, %55 : vector<8x64xf32>
      %57 = arith.mulf %56, %56 : vector<8x64xf32>
      %cst_35 = arith.constant dense<0.000000e+00> : vector<8xf32>
      %58 = vector.multi_reduction <add>, %57, %cst_35 [1] : vector<8x64xf32> to vector<8xf32>
      %59 = vector.shape_cast %58 : vector<8xf32> to vector<8x1xf32>
      %cst_36 = arith.constant 6.400000e+01 : f32
      %60 = vector.broadcast %cst_36 : f32 to vector<8x1xf32>
      %61 = arith.divf %59, %60 : vector<8x1xf32>
      %62 = vector.broadcast %54 : vector<8x1xf32> to vector<8x64xf32>
      %63 = arith.subf %48, %62 : vector<8x64xf32>
      %cst_37 = arith.constant 9.99999974E-6 : f32
      %64 = vector.broadcast %cst_37 : f32 to vector<8x1xf32>
      %65 = arith.addf %61, %64 : vector<8x1xf32>
      %66 = math.rsqrt %65 : vector<8x1xf32>
      %67 = vector.broadcast %66 : vector<8x1xf32> to vector<8x64xf32>
      %68 = arith.mulf %63, %67 : vector<8x64xf32>
      %69 = vector.broadcast %49 : vector<1x64xf32> to vector<8x64xf32>
      %70 = arith.mulf %68, %69 : vector<8x64xf32>
      %71 = vector.broadcast %50 : vector<1x64xf32> to vector<8x64xf32>
      %72 = arith.addf %70, %71 : vector<8x64xf32>
      %c0_38 = arith.constant 0 : index
      %c0_39 = arith.constant 0 : index
      %c0_40 = arith.constant 0 : index
      %73 = vector.load %arg9[%c0_38, %c0_39, %c0_40] : memref<1x8x64xf32, #tpu.memory_space<vmem>>, vector<1x8x64xf32>
      %74 = vector.shape_cast %73 : vector<1x8x64xf32> to vector<8x64xf32>
      %75 = vector.shape_cast %72 : vector<8x64xf32> to vector<1x8x64xf32>
      tpu.vector_store %arg9[%c0_38, %c0_39, %c0_40], %75 {strides = array<i32>} : memref<1x8x64xf32, #tpu.memory_space<vmem>>, vector<1x8x64xf32>,
    } else {
    }
    return
  }
  func.func @transform_0(%arg0: i32, %arg1: i32) -> (i32, i32, i32) {
    %c0_i32 = arith.constant 0 : i32
    %c0_i32_0 = arith.constant 0 : i32
    %c0_i32_1 = arith.constant 0 : i32
    return %arg0, %c0_i32, %c0_i32_0 : i32, i32, i32
  }
  func.func @transform_1(%arg0: i32, %arg1: i32) -> (i32, i32, i32) {
    %c0_i32 = arith.constant 0 : i32
    %c0_i32_0 = arith.constant 0 : i32
    %c0_i32_1 = arith.constant 0 : i32
    return %arg1, %c0_i32, %c0_i32_0 : i32, i32, i32
  }
  func.func @transform_2(%arg0: i32, %arg1: i32) -> (i32, i32, i32) {
    %c0_i32 = arith.constant 0 : i32
    %c0_i32_0 = arith.constant 0 : i32
    %c0_i32_1 = arith.constant 0 : i32
    return %arg1, %c0_i32, %c0_i32_0 : i32, i32, i32
  }
  func.func @transform_3(%arg0: i32, %arg1: i32) -> (i32, i32, i32) {
    %c0_i32 = arith.constant 0 : i32
    %c0_i32_0 = arith.constant 0 : i32
    %c0_i32_1 = arith.constant 0 : i32
    return %arg1, %c0_i32, %c0_i32_0 : i32, i32, i32
  }
  func.func @transform_4(%arg0: i32, %arg1: i32) -> (i32, i32) {
    %c0_i32 = arith.constant 0 : i32
    %c0_i32_0 = arith.constant 0 : i32
    %c0_i32_1 = arith.constant 0 : i32
    return %c0_i32, %c0_i32_0 : i32, i32
  }
  func.func @transform_5(%arg0: i32, %arg1: i32) -> (i32, i32) {
    %c0_i32 = arith.constant 0 : i32
    %c0_i32_0 = arith.constant 0 : i32
    %c0_i32_1 = arith.constant 0 : i32
    return %c0_i32, %c0_i32_0 : i32, i32
  }
  func.func @transform_6(%arg0: i32, %arg1: i32) -> (i32, i32) {
    %c0_i32 = arith.constant 0 : i32
    %c0_i32_0 = arith.constant 0 : i32
    %c0_i32_1 = arith.constant 0 : i32
    return %c0_i32, %c0_i32_0 : i32, i32
  }
  func.func @transform_7(%arg0: i32, %arg1: i32) -> (i32, i32, i32) {
    %c0_i32 = arith.constant 0 : i32
    %c0_i32_0 = arith.constant 0 : i32
    %c0_i32_1 = arith.constant 0 : i32
    return %arg0, %c0_i32, %c0_i32_0 : i32, i32, i32
  }
}

module attributes {stable_mosaic.version = 11 : i64} {
  func.func @_attn_block_kernel(%arg0: i32, %arg1: i32, %arg2: memref<1x8x64xf32, #tpu.memory_space<vmem>>, %arg3: memref<1x8x64xf32, #tpu.memory_space<vmem>>, %arg4: memref<1x64x48xbf16, #tpu.memory_space<vmem>>, %arg5: memref<1x1x48xf32, #tpu.memory_space<vmem>>, %arg6: memref<1x16x64xbf16, #tpu.memory_space<vmem>>, %arg7: memref<1x64xf32, #tpu.memory_space<vmem>>, %arg8: memref<1x64xf32, #tpu.memory_space<vmem>>, %arg9: memref<1x64xf32, #tpu.memory_space<vmem>>, %arg10: memref<1x8x64xf32, #tpu.memory_space<vmem>>, %arg11: memref<8x64xf32, #tpu.memory_space<vmem>>) attributes {dimension_semantics = [#tpu.dimension_semantics<parallel>, #tpu.dimension_semantics<arbitrary>], iteration_bounds = array<i64: 2, 4>, scalar_prefetch = 0 : i64, scratch_operands = 1 : i64, tpu.core_type = #tpu.core_type<tc>, window_params = [{transform_indices = @transform_0, window_bounds = array<i64: 1, 8, 64>}, {transform_indices = @transform_1, window_bounds = array<i64: 1, 8, 64>}, {transform_indices = @transform_2, window_bounds = array<i64: 1, 64, 48>}, {transform_indices = @transform_3, window_bounds = array<i64: 1, 1, 48>}, {transform_indices = @transform_4, window_bounds = array<i64: 1, 16, 64>}, {pipeline_mode = #tpu.pipeline_mode<synchronous>, transform_indices = @transform_5, window_bounds = array<i64: 1, 64>}, {pipeline_mode = #tpu.pipeline_mode<synchronous>, transform_indices = @transform_6, window_bounds = array<i64: 1, 64>}, {pipeline_mode = #tpu.pipeline_mode<synchronous>, transform_indices = @transform_7, window_bounds = array<i64: 1, 64>}, {transform_indices = @transform_8, window_bounds = array<i64: 1, 8, 64>}]} {
    %c0_i32 = arith.constant 0 : i32
    %0 = arith.cmpi eq, %arg1, %c0_i32 : i32
    %1 = arith.extui %0 : i1 to i32
    %c0_i32_0 = arith.constant 0 : i32
    %2 = arith.cmpi ne, %1, %c0_i32_0 : i32
    scf.if %2 {
      %cst_26 = arith.constant 0.000000e+00 : f32
      %51 = vector.broadcast %cst_26 : f32 to vector<8x64xf32>
      %c0_27 = arith.constant 0 : index
      %c0_28 = arith.constant 0 : index
      %52 = vector.load %arg11[%c0_27, %c0_28] : memref<8x64xf32, #tpu.memory_space<vmem>>, vector<8x64xf32>
      tpu.vector_store %arg11[%c0_27, %c0_28], %51 {strides = array<i32>} : memref<8x64xf32, #tpu.memory_space<vmem>>, vector<8x64xf32>,
    } else {
    }
    %c0 = arith.constant 0 : index
    %c0_1 = arith.constant 0 : index
    %c0_2 = arith.constant 0 : index
    %3 = vector.load %arg2[%c0, %c0_1, %c0_2] : memref<1x8x64xf32, #tpu.memory_space<vmem>>, vector<1x8x64xf32>
    %4 = vector.shape_cast %3 : vector<1x8x64xf32> to vector<8x64xf32>
    %c0_3 = arith.constant 0 : index
    %c0_4 = arith.constant 0 : index
    %c0_5 = arith.constant 0 : index
    %5 = vector.load %arg4[%c0_3, %c0_4, %c0_5] : memref<1x64x48xbf16, #tpu.memory_space<vmem>>, vector<1x64x48xbf16>
    %6 = vector.shape_cast %5 : vector<1x64x48xbf16> to vector<64x48xbf16>
    %c0_6 = arith.constant 0 : index
    %c0_7 = arith.constant 0 : index
    %c0_8 = arith.constant 0 : index
    %7 = vector.load %arg5[%c0_6, %c0_7, %c0_8] : memref<1x1x48xf32, #tpu.memory_space<vmem>>, vector<1x1x48xf32>
    %8 = vector.shape_cast %7 : vector<1x1x48xf32> to vector<1x48xf32>
    %c0_9 = arith.constant 0 : index
    %c0_10 = arith.constant 0 : index
    %c0_11 = arith.constant 0 : index
    %9 = vector.load %arg3[%c0_9, %c0_10, %c0_11] : memref<1x8x64xf32, #tpu.memory_space<vmem>>, vector<1x8x64xf32>
    %10 = vector.shape_cast %9 : vector<1x8x64xf32> to vector<8x64xf32>
    %11 = arith.truncf %4 : vector<8x64xf32> to vector<8x64xbf16>
    %12 = vector.extract_strided_slice %6 {offsets = [0, 0], sizes = [64, 16], strides = [1, 1]} : vector<64x48xbf16> to vector<64x16xbf16>
    %cst = arith.constant dense<0.000000e+00> : vector<8x16xf32>
    %13 = tpu.matmul %11, %12, %cst {dimension_numbers = #tpu.dot_dimension_numbers<[1], [0], [0], [1], [0, 0, 1, 1], [], []>} : vector<8x64xbf16>, vector<64x16xbf16>, vector<8x16xf32> -> vector<8x16xf32>
    %14 = vector.extract_strided_slice %8 {offsets = [0, 0], sizes = [1, 16], strides = [1, 1]} : vector<1x48xf32> to vector<1x16xf32>
    %15 = vector.broadcast %14 : vector<1x16xf32> to vector<8x16xf32>
    %16 = arith.addf %13, %15 : vector<8x16xf32>
    %17 = arith.truncf %10 : vector<8x64xf32> to vector<8x64xbf16>
    %18 = vector.extract_strided_slice %6 {offsets = [0, 16], sizes = [64, 32], strides = [1, 1]} : vector<64x48xbf16> to vector<64x32xbf16>
    %cst_12 = arith.constant dense<0.000000e+00> : vector<8x32xf32>
    %19 = tpu.matmul %17, %18, %cst_12 {dimension_numbers = #tpu.dot_dimension_numbers<[1], [0], [0], [1], [0, 0, 1, 1], [], []>} : vector<8x64xbf16>, vector<64x32xbf16>, vector<8x32xf32> -> vector<8x32xf32>
    %20 = vector.extract_strided_slice %8 {offsets = [0, 16], sizes = [1, 32], strides = [1, 1]} : vector<1x48xf32> to vector<1x32xf32>
    %21 = vector.broadcast %20 : vector<1x32xf32> to vector<8x32xf32>
    %22 = arith.addf %19, %21 : vector<8x32xf32>
    %23 = vector.extract_strided_slice %22 {offsets = [0, 0], sizes = [8, 16], strides = [1, 1]} : vector<8x32xf32> to vector<8x16xf32>
    %24 = vector.extract_strided_slice %22 {offsets = [0, 16], sizes = [8, 16], strides = [1, 1]} : vector<8x32xf32> to vector<8x16xf32>
    %25 = arith.truncf %16 : vector<8x16xf32> to vector<8x16xbf16>
    %26 = arith.truncf %23 : vector<8x16xf32> to vector<8x16xbf16>
    %cst_13 = arith.constant dense<0.000000e+00> : vector<8x8xf32>
    %27 = tpu.matmul %25, %26, %cst_13 {dimension_numbers = #tpu.dot_dimension_numbers<[1], [1], [0], [0], [0, 0, 1, 0], [], []>} : vector<8x16xbf16>, vector<8x16xbf16>, vector<8x8xf32> -> vector<8x8xf32>
    %cst_14 = arith.constant dense<0xFF800000> : vector<8xf32>
    %28 = vector.multi_reduction <maximumf>, %27, %cst_14 [1] : vector<8x8xf32> to vector<8xf32>
    %29 = vector.shape_cast %28 : vector<8xf32> to vector<8x1xf32>
    %30 = vector.broadcast %29 : vector<8x1xf32> to vector<8x8xf32>
    %31 = arith.subf %27, %30 : vector<8x8xf32>
    %32 = math.exp %31 : vector<8x8xf32>
    %cst_15 = arith.constant dense<0.000000e+00> : vector<8xf32>
    %33 = vector.multi_reduction <add>, %32, %cst_15 [1] : vector<8x8xf32> to vector<8xf32>
    %34 = vector.shape_cast %33 : vector<8xf32> to vector<8x1xf32>
    %35 = tpu.reciprocal %34 {approx = true} : vector<8x1xf32> -> vector<8x1xf32>
    %36 = vector.broadcast %35 : vector<8x1xf32> to vector<8x8xf32>
    %37 = arith.mulf %32, %36 : vector<8x8xf32>
    %38 = arith.truncf %37 : vector<8x8xf32> to vector<8x8xbf16>
    %39 = arith.truncf %24 : vector<8x16xf32> to vector<8x16xbf16>
    %cst_16 = arith.constant dense<0.000000e+00> : vector<8x16xf32>
    %40 = tpu.matmul %38, %39, %cst_16 {dimension_numbers = #tpu.dot_dimension_numbers<[1], [0], [0], [1], [0, 0, 1, 1], [], []>} : vector<8x8xbf16>, vector<8x16xbf16>, vector<8x16xf32> -> vector<8x16xf32>
    %c0_17 = arith.constant 0 : index
    %c0_18 = arith.constant 0 : index
    %41 = vector.load %arg11[%c0_17, %c0_18] : memref<8x64xf32, #tpu.memory_space<vmem>>, vector<8x64xf32>
    %42 = arith.truncf %40 : vector<8x16xf32> to vector<8x16xbf16>
    %c0_19 = arith.constant 0 : index
    %c0_20 = arith.constant 0 : index
    %c0_21 = arith.constant 0 : index
    %43 = vector.load %arg6[%c0_19, %c0_20, %c0_21] : memref<1x16x64xbf16, #tpu.memory_space<vmem>>, vector<1x16x64xbf16>
    %44 = vector.shape_cast %43 : vector<1x16x64xbf16> to vector<16x64xbf16>
    %cst_22 = arith.constant dense<0.000000e+00> : vector<8x64xf32>
    %45 = tpu.matmul %42, %44, %cst_22 {dimension_numbers = #tpu.dot_dimension_numbers<[1], [0], [0], [1], [0, 0, 1, 1], [], []>} : vector<8x16xbf16>, vector<16x64xbf16>, vector<8x64xf32> -> vector<8x64xf32>
    %46 = arith.addf %41, %45 : vector<8x64xf32>
    %c0_23 = arith.constant 0 : index
    %c0_24 = arith.constant 0 : index
    %47 = vector.load %arg11[%c0_23, %c0_24] : memref<8x64xf32, #tpu.memory_space<vmem>>, vector<8x64xf32>
    tpu.vector_store %arg11[%c0_23, %c0_24], %46 {strides = array<i32>} : memref<8x64xf32, #tpu.memory_space<vmem>>, vector<8x64xf32>,
    %c3_i32 = arith.constant 3 : i32
    %48 = arith.cmpi eq, %arg1, %c3_i32 : i32
    %49 = arith.extui %48 : i1 to i32
    %c0_i32_25 = arith.constant 0 : i32
    %50 = arith.cmpi ne, %49, %c0_i32_25 : i32
    scf.if %50 {
      %c0_26 = arith.constant 0 : index
      %c0_27 = arith.constant 0 : index
      %51 = vector.load %arg11[%c0_26, %c0_27] : memref<8x64xf32, #tpu.memory_space<vmem>>, vector<8x64xf32>
      %c0_28 = arith.constant 0 : index
      %c0_29 = arith.constant 0 : index
      %52 = vector.load %arg7[%c0_28, %c0_29] : memref<1x64xf32, #tpu.memory_space<vmem>>, vector<1x64xf32>
      %53 = vector.broadcast %52 : vector<1x64xf32> to vector<8x64xf32>
      %54 = arith.addf %51, %53 : vector<8x64xf32>
      %c0_30 = arith.constant 0 : index
      %c0_31 = arith.constant 0 : index
      %c0_32 = arith.constant 0 : index
      %55 = vector.load %arg2[%c0_30, %c0_31, %c0_32] : memref<1x8x64xf32, #tpu.memory_space<vmem>>, vector<1x8x64xf32>
      %56 = vector.shape_cast %55 : vector<1x8x64xf32> to vector<8x64xf32>
      %57 = arith.addf %54, %56 : vector<8x64xf32>
      %c0_33 = arith.constant 0 : index
      %c0_34 = arith.constant 0 : index
      %58 = vector.load %arg8[%c0_33, %c0_34] : memref<1x64xf32, #tpu.memory_space<vmem>>, vector<1x64xf32>
      %c0_35 = arith.constant 0 : index
      %c0_36 = arith.constant 0 : index
      %59 = vector.load %arg9[%c0_35, %c0_36] : memref<1x64xf32, #tpu.memory_space<vmem>>, vector<1x64xf32>
      %cst_37 = arith.constant dense<0.000000e+00> : vector<8xf32>
      %60 = vector.multi_reduction <add>, %57, %cst_37 [1] : vector<8x64xf32> to vector<8xf32>
      %61 = vector.shape_cast %60 : vector<8xf32> to vector<8x1xf32>
      %cst_38 = arith.constant 6.400000e+01 : f32
      %62 = vector.broadcast %cst_38 : f32 to vector<8x1xf32>
      %63 = arith.divf %61, %62 : vector<8x1xf32>
      %64 = vector.broadcast %63 : vector<8x1xf32> to vector<8x64xf32>
      %65 = arith.subf %57, %64 : vector<8x64xf32>
      %66 = arith.mulf %65, %65 : vector<8x64xf32>
      %cst_39 = arith.constant dense<0.000000e+00> : vector<8xf32>
      %67 = vector.multi_reduction <add>, %66, %cst_39 [1] : vector<8x64xf32> to vector<8xf32>
      %68 = vector.shape_cast %67 : vector<8xf32> to vector<8x1xf32>
      %cst_40 = arith.constant 6.400000e+01 : f32
      %69 = vector.broadcast %cst_40 : f32 to vector<8x1xf32>
      %70 = arith.divf %68, %69 : vector<8x1xf32>
      %71 = vector.broadcast %63 : vector<8x1xf32> to vector<8x64xf32>
      %72 = arith.subf %57, %71 : vector<8x64xf32>
      %cst_41 = arith.constant 9.99999974E-6 : f32
      %73 = vector.broadcast %cst_41 : f32 to vector<8x1xf32>
      %74 = arith.addf %70, %73 : vector<8x1xf32>
      %75 = math.rsqrt %74 : vector<8x1xf32>
      %76 = vector.broadcast %75 : vector<8x1xf32> to vector<8x64xf32>
      %77 = arith.mulf %72, %76 : vector<8x64xf32>
      %78 = vector.broadcast %58 : vector<1x64xf32> to vector<8x64xf32>
      %79 = arith.mulf %77, %78 : vector<8x64xf32>
      %80 = vector.broadcast %59 : vector<1x64xf32> to vector<8x64xf32>
      %81 = arith.addf %79, %80 : vector<8x64xf32>
      %c0_42 = arith.constant 0 : index
      %c0_43 = arith.constant 0 : index
      %c0_44 = arith.constant 0 : index
      %82 = vector.load %arg10[%c0_42, %c0_43, %c0_44] : memref<1x8x64xf32, #tpu.memory_space<vmem>>, vector<1x8x64xf32>
      %83 = vector.shape_cast %82 : vector<1x8x64xf32> to vector<8x64xf32>
      %84 = vector.shape_cast %81 : vector<8x64xf32> to vector<1x8x64xf32>
      tpu.vector_store %arg10[%c0_42, %c0_43, %c0_44], %84 {strides = array<i32>} : memref<1x8x64xf32, #tpu.memory_space<vmem>>, vector<1x8x64xf32>,
    } else {
    }
    return
  }
  func.func @transform_0(%arg0: i32, %arg1: i32) -> (i32, i32, i32) {
    %c0_i32 = arith.constant 0 : i32
    %c0_i32_0 = arith.constant 0 : i32
    %c0_i32_1 = arith.constant 0 : i32
    return %arg0, %c0_i32, %c0_i32_0 : i32, i32, i32
  }
  func.func @transform_1(%arg0: i32, %arg1: i32) -> (i32, i32, i32) {
    %c0_i32 = arith.constant 0 : i32
    %c0_i32_0 = arith.constant 0 : i32
    %c0_i32_1 = arith.constant 0 : i32
    return %arg0, %c0_i32, %c0_i32_0 : i32, i32, i32
  }
  func.func @transform_2(%arg0: i32, %arg1: i32) -> (i32, i32, i32) {
    %c0_i32 = arith.constant 0 : i32
    %c0_i32_0 = arith.constant 0 : i32
    %c0_i32_1 = arith.constant 0 : i32
    return %arg1, %c0_i32, %c0_i32_0 : i32, i32, i32
  }
  func.func @transform_3(%arg0: i32, %arg1: i32) -> (i32, i32, i32) {
    %c0_i32 = arith.constant 0 : i32
    %c0_i32_0 = arith.constant 0 : i32
    %c0_i32_1 = arith.constant 0 : i32
    return %arg1, %c0_i32, %c0_i32_0 : i32, i32, i32
  }
  func.func @transform_4(%arg0: i32, %arg1: i32) -> (i32, i32, i32) {
    %c0_i32 = arith.constant 0 : i32
    %c0_i32_0 = arith.constant 0 : i32
    %c0_i32_1 = arith.constant 0 : i32
    return %arg1, %c0_i32, %c0_i32_0 : i32, i32, i32
  }
  func.func @transform_5(%arg0: i32, %arg1: i32) -> (i32, i32) {
    %c0_i32 = arith.constant 0 : i32
    %c0_i32_0 = arith.constant 0 : i32
    %c0_i32_1 = arith.constant 0 : i32
    return %c0_i32, %c0_i32_0 : i32, i32
  }
  func.func @transform_6(%arg0: i32, %arg1: i32) -> (i32, i32) {
    %c0_i32 = arith.constant 0 : i32
    %c0_i32_0 = arith.constant 0 : i32
    %c0_i32_1 = arith.constant 0 : i32
    return %c0_i32, %c0_i32_0 : i32, i32
  }
  func.func @transform_7(%arg0: i32, %arg1: i32) -> (i32, i32) {
    %c0_i32 = arith.constant 0 : i32
    %c0_i32_0 = arith.constant 0 : i32
    %c0_i32_1 = arith.constant 0 : i32
    return %c0_i32, %c0_i32_0 : i32, i32
  }
  func.func @transform_8(%arg0: i32, %arg1: i32) -> (i32, i32, i32) {
    %c0_i32 = arith.constant 0 : i32
    %c0_i32_0 = arith.constant 0 : i32
    %c0_i32_1 = arith.constant 0 : i32
    return %arg0, %c0_i32, %c0_i32_0 : i32, i32, i32
  }
}

module attributes {stable_mosaic.version = 11 : i64} {
  func.func @_ffn_block_kernel(%arg0: i32, %arg1: memref<16x64xf32, #tpu.memory_space<vmem>>, %arg2: memref<64x2048xbf16, #tpu.memory_space<vmem>>, %arg3: memref<1x2048xf32, #tpu.memory_space<vmem>>, %arg4: memref<2048x64xbf16, #tpu.memory_space<vmem>>, %arg5: memref<1x64xf32, #tpu.memory_space<vmem>>, %arg6: memref<1x64xf32, #tpu.memory_space<vmem>>, %arg7: memref<1x64xf32, #tpu.memory_space<vmem>>, %arg8: memref<16x64xf32, #tpu.memory_space<vmem>>) attributes {dimension_semantics = [#tpu.dimension_semantics<parallel>], iteration_bounds = array<i64: 1>, scalar_prefetch = 0 : i64, scratch_operands = 0 : i64, tpu.core_type = #tpu.core_type<tc>, window_params = [{transform_indices = @transform_0, window_bounds = array<i64: 16, 64>}, {pipeline_mode = #tpu.pipeline_mode<synchronous>, transform_indices = @transform_1, window_bounds = array<i64: 64, 2048>}, {pipeline_mode = #tpu.pipeline_mode<synchronous>, transform_indices = @transform_2, window_bounds = array<i64: 1, 2048>}, {pipeline_mode = #tpu.pipeline_mode<synchronous>, transform_indices = @transform_3, window_bounds = array<i64: 2048, 64>}, {pipeline_mode = #tpu.pipeline_mode<synchronous>, transform_indices = @transform_4, window_bounds = array<i64: 1, 64>}, {pipeline_mode = #tpu.pipeline_mode<synchronous>, transform_indices = @transform_5, window_bounds = array<i64: 1, 64>}, {pipeline_mode = #tpu.pipeline_mode<synchronous>, transform_indices = @transform_6, window_bounds = array<i64: 1, 64>}, {transform_indices = @transform_7, window_bounds = array<i64: 16, 64>}]} {
    %c0 = arith.constant 0 : index
    %c0_0 = arith.constant 0 : index
    %0 = vector.load %arg1[%c0, %c0_0] : memref<16x64xf32, #tpu.memory_space<vmem>>, vector<16x64xf32>
    %1 = arith.truncf %0 : vector<16x64xf32> to vector<16x64xbf16>
    %c0_1 = arith.constant 0 : index
    %c0_2 = arith.constant 0 : index
    %2 = vector.load %arg2[%c0_1, %c0_2] : memref<64x2048xbf16, #tpu.memory_space<vmem>>, vector<64x2048xbf16>
    %cst = arith.constant dense<0.000000e+00> : vector<16x2048xf32>
    %3 = tpu.matmul %1, %2, %cst {dimension_numbers = #tpu.dot_dimension_numbers<[1], [0], [0], [1], [0, 0, 1, 1], [], []>} : vector<16x64xbf16>, vector<64x2048xbf16>, vector<16x2048xf32> -> vector<16x2048xf32>
    %c0_3 = arith.constant 0 : index
    %c0_4 = arith.constant 0 : index
    %4 = vector.load %arg3[%c0_3, %c0_4] : memref<1x2048xf32, #tpu.memory_space<vmem>>, vector<1x2048xf32>
    %5 = vector.broadcast %4 : vector<1x2048xf32> to vector<16x2048xf32>
    %6 = arith.addf %3, %5 : vector<16x2048xf32>
    %cst_5 = arith.constant 0.000000e+00 : f32
    %7 = vector.broadcast %cst_5 : f32 to vector<16x2048xf32>
    %8 = arith.maximumf %6, %7 : vector<16x2048xf32>
    %9 = arith.truncf %8 : vector<16x2048xf32> to vector<16x2048xbf16>
    %c0_6 = arith.constant 0 : index
    %c0_7 = arith.constant 0 : index
    %10 = vector.load %arg4[%c0_6, %c0_7] : memref<2048x64xbf16, #tpu.memory_space<vmem>>, vector<2048x64xbf16>
    %cst_8 = arith.constant dense<0.000000e+00> : vector<16x64xf32>
    %11 = tpu.matmul %9, %10, %cst_8 {dimension_numbers = #tpu.dot_dimension_numbers<[1], [0], [0], [1], [0, 0, 1, 1], [], []>} : vector<16x2048xbf16>, vector<2048x64xbf16>, vector<16x64xf32> -> vector<16x64xf32>
    %c0_9 = arith.constant 0 : index
    %c0_10 = arith.constant 0 : index
    %12 = vector.load %arg5[%c0_9, %c0_10] : memref<1x64xf32, #tpu.memory_space<vmem>>, vector<1x64xf32>
    %13 = vector.broadcast %12 : vector<1x64xf32> to vector<16x64xf32>
    %14 = arith.addf %11, %13 : vector<16x64xf32>
    %15 = arith.addf %14, %0 : vector<16x64xf32>
    %c0_11 = arith.constant 0 : index
    %c0_12 = arith.constant 0 : index
    %16 = vector.load %arg6[%c0_11, %c0_12] : memref<1x64xf32, #tpu.memory_space<vmem>>, vector<1x64xf32>
    %c0_13 = arith.constant 0 : index
    %c0_14 = arith.constant 0 : index
    %17 = vector.load %arg7[%c0_13, %c0_14] : memref<1x64xf32, #tpu.memory_space<vmem>>, vector<1x64xf32>
    %cst_15 = arith.constant dense<0.000000e+00> : vector<16xf32>
    %18 = vector.multi_reduction <add>, %15, %cst_15 [1] : vector<16x64xf32> to vector<16xf32>
    %19 = vector.shape_cast %18 : vector<16xf32> to vector<16x1xf32>
    %cst_16 = arith.constant 6.400000e+01 : f32
    %20 = vector.broadcast %cst_16 : f32 to vector<16x1xf32>
    %21 = arith.divf %19, %20 : vector<16x1xf32>
    %22 = vector.broadcast %21 : vector<16x1xf32> to vector<16x64xf32>
    %23 = arith.subf %15, %22 : vector<16x64xf32>
    %24 = arith.mulf %23, %23 : vector<16x64xf32>
    %cst_17 = arith.constant dense<0.000000e+00> : vector<16xf32>
    %25 = vector.multi_reduction <add>, %24, %cst_17 [1] : vector<16x64xf32> to vector<16xf32>
    %26 = vector.shape_cast %25 : vector<16xf32> to vector<16x1xf32>
    %cst_18 = arith.constant 6.400000e+01 : f32
    %27 = vector.broadcast %cst_18 : f32 to vector<16x1xf32>
    %28 = arith.divf %26, %27 : vector<16x1xf32>
    %29 = vector.broadcast %21 : vector<16x1xf32> to vector<16x64xf32>
    %30 = arith.subf %15, %29 : vector<16x64xf32>
    %cst_19 = arith.constant 9.99999974E-6 : f32
    %31 = vector.broadcast %cst_19 : f32 to vector<16x1xf32>
    %32 = arith.addf %28, %31 : vector<16x1xf32>
    %33 = math.rsqrt %32 : vector<16x1xf32>
    %34 = vector.broadcast %33 : vector<16x1xf32> to vector<16x64xf32>
    %35 = arith.mulf %30, %34 : vector<16x64xf32>
    %36 = vector.broadcast %16 : vector<1x64xf32> to vector<16x64xf32>
    %37 = arith.mulf %35, %36 : vector<16x64xf32>
    %38 = vector.broadcast %17 : vector<1x64xf32> to vector<16x64xf32>
    %39 = arith.addf %37, %38 : vector<16x64xf32>
    %c0_20 = arith.constant 0 : index
    %c0_21 = arith.constant 0 : index
    %40 = vector.load %arg8[%c0_20, %c0_21] : memref<16x64xf32, #tpu.memory_space<vmem>>, vector<16x64xf32>
    tpu.vector_store %arg8[%c0_20, %c0_21], %39 {strides = array<i32>} : memref<16x64xf32, #tpu.memory_space<vmem>>, vector<16x64xf32>,
    return
  }
  func.func @transform_0(%arg0: i32) -> (i32, i32) {
    %c0_i32 = arith.constant 0 : i32
    %c0_i32_0 = arith.constant 0 : i32
    return %arg0, %c0_i32 : i32, i32
  }
  func.func @transform_1(%arg0: i32) -> (i32, i32) {
    %c0_i32 = arith.constant 0 : i32
    %c0_i32_0 = arith.constant 0 : i32
    %c0_i32_1 = arith.constant 0 : i32
    return %c0_i32, %c0_i32_0 : i32, i32
  }
  func.func @transform_2(%arg0: i32) -> (i32, i32) {
    %c0_i32 = arith.constant 0 : i32
    %c0_i32_0 = arith.constant 0 : i32
    %c0_i32_1 = arith.constant 0 : i32
    return %c0_i32, %c0_i32_0 : i32, i32
  }
  func.func @transform_3(%arg0: i32) -> (i32, i32) {
    %c0_i32 = arith.constant 0 : i32
    %c0_i32_0 = arith.constant 0 : i32
    %c0_i32_1 = arith.constant 0 : i32
    return %c0_i32, %c0_i32_0 : i32, i32
  }
  func.func @transform_4(%arg0: i32) -> (i32, i32) {
    %c0_i32 = arith.constant 0 : i32
    %c0_i32_0 = arith.constant 0 : i32
    %c0_i32_1 = arith.constant 0 : i32
    return %c0_i32, %c0_i32_0 : i32, i32
  }
  func.func @transform_5(%arg0: i32) -> (i32, i32) {
    %c0_i32 = arith.constant 0 : i32
    %c0_i32_0 = arith.constant 0 : i32
    %c0_i32_1 = arith.constant 0 : i32
    return %c0_i32, %c0_i32_0 : i32, i32
  }
  func.func @transform_6(%arg0: i32) -> (i32, i32) {
    %c0_i32 = arith.constant 0 : i32
    %c0_i32_0 = arith.constant 0 : i32
    %c0_i32_1 = arith.constant 0 : i32
    return %c0_i32, %c0_i32_0 : i32, i32
  }
  func.func @transform_7(%arg0: i32) -> (i32, i32) {
    %c0_i32 = arith.constant 0 : i32
    %c0_i32_0 = arith.constant 0 : i32
    return %arg0, %c0_i32 : i32, i32
  }
}

module attributes {stable_mosaic.version = 11 : i64} {
  func.func @_fused_matmul_kernel(%arg0: i32, %arg1: memref<16x64xf32, #tpu.memory_space<vmem>>, %arg2: memref<64x32xbf16, #tpu.memory_space<vmem>>, %arg3: memref<1x32xf32, #tpu.memory_space<vmem>>, %arg4: memref<1x32xf32, #tpu.memory_space<vmem>>, %arg5: memref<1x32xf32, #tpu.memory_space<vmem>>, %arg6: memref<16x32xf32, #tpu.memory_space<vmem>>) attributes {dimension_semantics = [#tpu.dimension_semantics<parallel>], iteration_bounds = array<i64: 1>, scalar_prefetch = 0 : i64, scratch_operands = 0 : i64, tpu.core_type = #tpu.core_type<tc>, window_params = [{transform_indices = @transform_0, window_bounds = array<i64: 16, 64>}, {pipeline_mode = #tpu.pipeline_mode<synchronous>, transform_indices = @transform_1, window_bounds = array<i64: 64, 32>}, {pipeline_mode = #tpu.pipeline_mode<synchronous>, transform_indices = @transform_2, window_bounds = array<i64: 1, 32>}, {pipeline_mode = #tpu.pipeline_mode<synchronous>, transform_indices = @transform_3, window_bounds = array<i64: 1, 32>}, {pipeline_mode = #tpu.pipeline_mode<synchronous>, transform_indices = @transform_4, window_bounds = array<i64: 1, 32>}, {transform_indices = @transform_5, window_bounds = array<i64: 16, 32>}]} {
    %c0 = arith.constant 0 : index
    %c0_0 = arith.constant 0 : index
    %0 = vector.load %arg1[%c0, %c0_0] : memref<16x64xf32, #tpu.memory_space<vmem>>, vector<16x64xf32>
    %1 = arith.truncf %0 : vector<16x64xf32> to vector<16x64xbf16>
    %c0_1 = arith.constant 0 : index
    %c0_2 = arith.constant 0 : index
    %2 = vector.load %arg2[%c0_1, %c0_2] : memref<64x32xbf16, #tpu.memory_space<vmem>>, vector<64x32xbf16>
    %cst = arith.constant dense<0.000000e+00> : vector<16x32xf32>
    %3 = tpu.matmul %1, %2, %cst {dimension_numbers = #tpu.dot_dimension_numbers<[1], [0], [0], [1], [0, 0, 1, 1], [], []>} : vector<16x64xbf16>, vector<64x32xbf16>, vector<16x32xf32> -> vector<16x32xf32>
    %c0_3 = arith.constant 0 : index
    %c0_4 = arith.constant 0 : index
    %4 = vector.load %arg3[%c0_3, %c0_4] : memref<1x32xf32, #tpu.memory_space<vmem>>, vector<1x32xf32>
    %5 = vector.broadcast %4 : vector<1x32xf32> to vector<16x32xf32>
    %6 = arith.addf %3, %5 : vector<16x32xf32>
    %c0_5 = arith.constant 0 : index
    %c0_6 = arith.constant 0 : index
    %7 = vector.load %arg4[%c0_5, %c0_6] : memref<1x32xf32, #tpu.memory_space<vmem>>, vector<1x32xf32>
    %c0_7 = arith.constant 0 : index
    %c0_8 = arith.constant 0 : index
    %8 = vector.load %arg5[%c0_7, %c0_8] : memref<1x32xf32, #tpu.memory_space<vmem>>, vector<1x32xf32>
    %cst_9 = arith.constant dense<0.000000e+00> : vector<16xf32>
    %9 = vector.multi_reduction <add>, %6, %cst_9 [1] : vector<16x32xf32> to vector<16xf32>
    %10 = vector.shape_cast %9 : vector<16xf32> to vector<16x1xf32>
    %cst_10 = arith.constant 3.200000e+01 : f32
    %11 = vector.broadcast %cst_10 : f32 to vector<16x1xf32>
    %12 = arith.divf %10, %11 : vector<16x1xf32>
    %13 = vector.broadcast %12 : vector<16x1xf32> to vector<16x32xf32>
    %14 = arith.subf %6, %13 : vector<16x32xf32>
    %15 = arith.mulf %14, %14 : vector<16x32xf32>
    %cst_11 = arith.constant dense<0.000000e+00> : vector<16xf32>
    %16 = vector.multi_reduction <add>, %15, %cst_11 [1] : vector<16x32xf32> to vector<16xf32>
    %17 = vector.shape_cast %16 : vector<16xf32> to vector<16x1xf32>
    %cst_12 = arith.constant 3.200000e+01 : f32
    %18 = vector.broadcast %cst_12 : f32 to vector<16x1xf32>
    %19 = arith.divf %17, %18 : vector<16x1xf32>
    %20 = vector.broadcast %12 : vector<16x1xf32> to vector<16x32xf32>
    %21 = arith.subf %6, %20 : vector<16x32xf32>
    %cst_13 = arith.constant 9.99999974E-6 : f32
    %22 = vector.broadcast %cst_13 : f32 to vector<16x1xf32>
    %23 = arith.addf %19, %22 : vector<16x1xf32>
    %24 = math.rsqrt %23 : vector<16x1xf32>
    %25 = vector.broadcast %24 : vector<16x1xf32> to vector<16x32xf32>
    %26 = arith.mulf %21, %25 : vector<16x32xf32>
    %27 = vector.broadcast %7 : vector<1x32xf32> to vector<16x32xf32>
    %28 = arith.mulf %26, %27 : vector<16x32xf32>
    %29 = vector.broadcast %8 : vector<1x32xf32> to vector<16x32xf32>
    %30 = arith.addf %28, %29 : vector<16x32xf32>
    %c0_14 = arith.constant 0 : index
    %c0_15 = arith.constant 0 : index
    %31 = vector.load %arg6[%c0_14, %c0_15] : memref<16x32xf32, #tpu.memory_space<vmem>>, vector<16x32xf32>
    tpu.vector_store %arg6[%c0_14, %c0_15], %30 {strides = array<i32>} : memref<16x32xf32, #tpu.memory_space<vmem>>, vector<16x32xf32>,
    return
  }
  func.func @transform_0(%arg0: i32) -> (i32, i32) {
    %c0_i32 = arith.constant 0 : i32
    %c0_i32_0 = arith.constant 0 : i32
    return %arg0, %c0_i32 : i32, i32
  }
  func.func @transform_1(%arg0: i32) -> (i32, i32) {
    %c0_i32 = arith.constant 0 : i32
    %c0_i32_0 = arith.constant 0 : i32
    %c0_i32_1 = arith.constant 0 : i32
    return %c0_i32, %c0_i32_0 : i32, i32
  }
  func.func @transform_2(%arg0: i32) -> (i32, i32) {
    %c0_i32 = arith.constant 0 : i32
    %c0_i32_0 = arith.constant 0 : i32
    %c0_i32_1 = arith.constant 0 : i32
    return %c0_i32, %c0_i32_0 : i32, i32
  }
  func.func @transform_3(%arg0: i32) -> (i32, i32) {
    %c0_i32 = arith.constant 0 : i32
    %c0_i32_0 = arith.constant 0 : i32
    %c0_i32_1 = arith.constant 0 : i32
    return %c0_i32, %c0_i32_0 : i32, i32
  }
  func.func @transform_4(%arg0: i32) -> (i32, i32) {
    %c0_i32 = arith.constant 0 : i32
    %c0_i32_0 = arith.constant 0 : i32
    %c0_i32_1 = arith.constant 0 : i32
    return %c0_i32, %c0_i32_0 : i32, i32
  }
  func.func @transform_5(%arg0: i32) -> (i32, i32) {
    %c0_i32 = arith.constant 0 : i32
    %c0_i32_0 = arith.constant 0 : i32
    return %arg0, %c0_i32 : i32, i32
  }
}

</mosaic_0001>

<bundles_post_ra>
// kernel: transformer_forward.8
= control target key start
LH: loop header
LB: loop body
LE: loop exit
PB: predicated region body
PF: predicated region fallthrough
CT: control target
= control target key end

     0   :  { %vm25_vm0 = vcmask 261120   ;;  %v169_v14 = vmov 0.0   ;;  %vm170_vm1 = vmmov 0   ;;  %vm137_vm2 = vcmask 523264   ;;  %s233_s0 = inlined_call_operand.vmem [shape: f32[16,32], index: 0, kind: input, shape index: {}]   ;;  %s234_s1 = inlined_call_operand.vmem [shape: bf16[32,64], index: 1, kind: input, shape index: {}]   ;;  %s235_s3 = inlined_call_operand.vmem [shape: f32[1,32], index: 3, kind: input, shape index: {}]   ;;  %s236_s4 = inlined_call_operand.vmem [shape: f32[1,32], index: 4, kind: input, shape index: {}]   ;;  %s237_s2 = inlined_call_operand.vmem [shape: f32[1,64], index: 2, kind: input, shape index: {}]   ;;  %s238_s5 = inlined_call_operand.vmem [shape: f32[16,64], index: 5, kind: output, shape index: {}]  }
   0x1   :  { %v21_v0 = vld [vmem:[%s233_s0] sm:$0xff]  ;;  %v22_v1 = vld [vmem:[%s233_s0 + $0x8] sm:$0xff]  ;;  %153 = vmatprep.subr.bf16.mxu0 %v169_v14  ;;  %157 = vmatprep.mubr.msk.bf16.mxu0 %vm170_vm1, %v169_v14 }
   0x2   :  { %v26_v2 = vsel %vm25_vm0, %v21_v0, 0.0  ;;  %v29_v3 = vsel %vm25_vm0, %v22_v1, 0.0  ;;  %v163_v15 = vld [vmem:[%s234_s1 + $0x8] sm:$0xff]   ;;  %v164_v16 = vld [vmem:[%s234_s1] sm:$0xff]  }
   0x3   :  { %27 = vadd.xlane.f32.xlu0 %v26_v2  ;;  %154 = vmatpush3.bf16.msra.mxu0 %v163_v15  ;;  %v144_v25 = vld [vmem:[%s235_s3] ss:$0 sm:$0xff] }
   0x4   :  { %155 = vmatprep.subr.bf16.mxu0 %v169_v14  ;;  %v145_v29 = vld [vmem:[%s236_s4] ss:$0 sm:$0xff] }
   0x5   :  { %v146_v34 = vld [vmem:[%s237_s2] ss:$0 sm:$0xff] }
   0x7   :  { %30 = vadd.xlane.f32.xlu0 %v29_v3  ;;  %156 = vmatpush3.bf16.msra.mxu0 %v164_v16 }
  0x8c   :  { %v28_v4 = vpop.xlane.xlu0 %27 }
  0x8d   :  { %v33_v5 = vmul.f32 0.03125, %v28_v4 }
  0x8f   :  { %v35_v6 = vsub.f32 %v21_v0, %v33_v5 }
  0x90   :  { %v31_v7 = vpop.xlane.xlu0 %30 }
  0x91   :  { %v34_v8 = vmul.f32 0.03125, %v31_v7  ;;  %v37_v9 = vmul.f32 %v35_v6, %v35_v6 }
  0x93   :  { %v36_v10 = vsub.f32 %v22_v1, %v34_v8  ;;  %v39_v11 = vsel %vm25_vm0, %v37_v9, 0.0 }
  0x94   :  { %40 = vadd.xlane.f32.xlu1 %v39_v11 }
  0x95   :  { %v38_v12 = vmul.f32 %v36_v10, %v36_v10 }
  0x97   :  { %v42_v13 = vsel %vm25_vm0, %v38_v12, 0.0 }
  0x98   :  { %43 = vadd.xlane.f32.xlu1 %v42_v13 }
 0x11d   :  { %v41_v17 = vpop.xlane.xlu1 %40 }
 0x11e   :  { %v45_v18 = vmul.f32 0.03125, %v41_v17 }
 0x120   :  { %v47_v19 = vadd.f32 1e-05, %v45_v18 }
 0x121   :  { %v44_v20 = vpop.xlane.xlu1 %43 }
 0x122   :  { %165 = vrsqrt.f32 %v47_v19  ;;  %v46_v21 = vmul.f32 0.03125, %v44_v20 }
 0x124   :  { %v48_v22 = vadd.f32 1e-05, %v46_v21 }
 0x126   :  { %167 = vrsqrt.f32 %v48_v22 }
 0x12f   :  { %v166_v23 = vpop.eup %165 }
 0x130   :  { %v51_v24 = vmul.f32 %v166_v23, %v35_v6 }
 0x132   :  { %v59_v28 = vmul.f32 %v144_v25, %v51_v24 }
 0x133   :  { %v168_v26 = vpop.eup %167 }
 0x134   :  { %v52_v27 = vmul.f32 %v168_v26, %v36_v10  ;;  %v67_v31 = vadd.f32 %v145_v29, %v59_v28 }
 0x136   :  { %v60_v30 = vmul.f32 %v144_v25, %v52_v27 }
 0x138   :  { %v68_v32 = vadd.f32 %v145_v29, %v60_v30 }
 0x13a   :  { %v69_v33 = vpack.c.bf16 %v68_v32, %v67_v31 }
 0x13c   :  { %158 = vmatmul.mubr.msk.bf16.vlgmr.msra.gmra.mxu0 %vm25_vm0, %v69_v33 }
 0x1fc   :  { %v130_v35 = vpop.f32.mrf.mxu0 }
 0x1fd   :  { %v131_v36 = vadd.f32 %v146_v34, %v130_v35 }
 0x1fe   :  { %v159_v37 = vpop.f32.mrf.mxu0 }
 0x1ff   :  { %138 = vst.msk [vmem:[%s238_s5] sm:$0xff] %vm137_vm2, %v131_v36 }
 0x200   :  { %v133_v38 = vpop.f32.mrf.mxu0 }
 0x201   :  { %v134_v39 = vadd.f32 %v146_v34, %v133_v38 }
 0x202   :  { %v160_v40 = vpop.f32.mrf.mxu0 }
 0x203   :  { %139 = vst.msk [vmem:[%s238_s5 + $0x8] sm:$0xff] %vm137_vm2, %v134_v39 }

// kernel: transformer_forward.9
= control target key start
LH: loop header
LB: loop body
LE: loop exit
PB: predicated region body
PF: predicated region fallthrough
CT: control target
= control target key end

     0   :  { %s955_s24 = smov 0   ;;  %s957_s25 = smov 0   ;;  %s1065_s0 = inlined_call_operand.vmem [shape: f32[2,8,64], index: 0, kind: input, shape index: {}]   ;;  %s1066_s1 = inlined_call_operand.vmem [shape: bf16[4,64,48], index: 1, kind: input, shape index: {}]   ;;  %s1067_s2 = inlined_call_operand.vmem [shape: f32[4,1,48], index: 2, kind: input, shape index: {}]   ;;  %s1068_s3 = inlined_call_operand.vmem [shape: bf16[4,16,64], index: 3, kind: input, shape index: {}]   ;;  %s1069_s4 = inlined_call_operand.vmem [shape: f32[1,64], index: 4, kind: input, shape index: {}]   ;;  %s1070_s5 = inlined_call_operand.vmem [shape: f32[1,64], index: 5, kind: input, shape index: {}]   ;;  %s1071_s6 = inlined_call_operand.vmem [shape: f32[1,64], index: 6, kind: input, shape index: {}]   ;;  %s1072_s7 = inlined_call_operand.vmem [shape: f32[2,8,64], index: 7, kind: output, shape index: {}]  }
   0x1   :  { %s959_s26 = smov 0   ;;  %s961_s27 = smov 0  }
   0x2   :  { %s963_s28 = smov 0  }
   0x3 LB: > { %s26_s29 = sadd.s32 1, %s900_s26  ;;  %s29_s30 = sadd.s32 1, %s904_s27  ;;  %s908_s28 = sphi %s963_s28, %s17_s28   ;;  %s904_s27 = sphi %s961_s27, %s1078_s27   ;;  %s900_s26 = sphi %s959_s26, %s1077_s26   ;;  %s896_s25 = sphi %s957_s25, %s1076_s25   ;;  %s892_s24 = sphi %s955_s24, %s1075_s24  }
   0x4   : > { %p27_p0 = scmp.ge.s32.totalorder %s26_s29, 4  ;;  %p747_p1 = scmp.ge.s32.totalorder %s908_s28, 1 }
   0x5   : > { %p276_p2 = scmp.lt.s32.totalorder %s908_s28, 9 }
   0x6   : > { %s1080_s29 = smov (%p27_p0, %s26_s29), 0  ;;  %s1082_s30 = smov (!%p27_p0, %s29_s30), %s904_s27 }
   0x7   : > { %p277_p3 = pnand %p747_p1, %p276_p2  ;;  %p31_p4 = scmp.ge.s32.totalorder %s1082_s30, 2 }
   0x8   : > { %p319_p5 = scmp.lt.s32.totalorder (!%p277_p3), %s896_s25, 1  ;;  %p323_p6 = scmp.lt.s32.totalorder (!%p277_p3), %s892_s24, 3 }
   0x9   : > { %s1084_s30 = smov (%p31_p4, %s1082_s30), 0  ;;  %280 = sbr.rel (%p277_p3) target bundleno = 1578 (0x62a), region = 48 }
   0xa   : > { %1073 = sst [smem:[#allocation3_spill]] %s1084_s30  ;;  %p754_p7 = scmp.ne.s32.totalorder (!%p277_p3), %s892_s24, 0 }
   0xe   : > { %s1086_s25 = smov (!%p319_p5, %s896_s25), 1 }
   0xf   : > { %s989_s8 = scalar_select %p323_p6, %s892_s24, 3 }
  0x10   : > { %s748_s9 = sshll.u32 %s1086_s25, 3  ;;  %344 = sbr.rel (%p754_p7) target bundleno = 23 (0x17), region = 52 }
  0x11   : > { %s994_s12 = scalar_lea.vmem %s1065_s0, %s748_s9  ;;  %s771_s13 = sshll.u32 %s989_s8, 5 }
  0x12   : > { %s327_s16 = scalar_lea.vmem %s1066_s1, %s771_s13  ;;  %s330_s19 = scalar_lea.vmem %s1067_s2, %s989_s8 }
  0x13   : > { %s772_s20 = sshll.u32 %s989_s8, 3  ;;  %s1008_s23 = scalar_lea.vmem %s1072_s7, %s748_s9 }
  0x14   : > { %s1013_s10 = scalar_lea.vmem %s1068_s3, %s772_s20 }
  0x15   : > { %vm345_vm0 = vcmask 523264   ;;  %v910_v0 = vmov 0.0  }
  0x16   : > { %346 = vst.msk [vmem:[#allocation2] sm:$0xff] %vm345_vm0, %v910_v0 }
  0x17 PF: > { %v859_v1 = vld [vmem:[%s327_s16 + $0x18] sm:$0xff]   ;;  %v911_v2 = vmov 0.0   ;;  %v860_v3 = vld [vmem:[%s327_s16 + $0x10] sm:$0xff]   ;;  %vm912_vm1 = vmmov 0   ;;  %v861_v4 = vld [vmem:[%s327_s16 + $0x8] sm:$0xff]   ;;  %vm388_vm2 = vcmask 523264  }
  0x18   : > { %784 = vmatprep.subr.bf16.mxu0 %v911_v2  ;;  %796 = vmatprep.subr.bf16.mxu1 %v911_v2  ;;  %v862_v5 = vld [vmem:[%s327_s16] sm:$0xff]   ;;  %s913_s11 = smov 112   ;;  %vm436_vm3 = vcmask 130048   ;;  %vm483_vm4 = vcmask 64512   ;;  %s914_s8 = smov 96   ;;  %vm501_vm5 = vcmask 1043456  }
  0x19   : > { %785 = vmatpush3.bf16.msra.mxu0 %v859_v1  ;;  %792 = vmatprep.mubr.msk.bf16.mxu0 %vm912_vm1, %v911_v2  ;;  %v347_v6 = vld [vmem:[%s994_s12] sm:$0xff]  ;;  %p765_p8 = scmp.ne.s32.totalorder %s892_s24, 3 }
  0x1a   : > { %786 = vmatprep.subr.bf16.mxu0 %v911_v2  ;;  %798 = vmatprep.mubr.msk.bf16.mxu1 %vm912_vm1, %v911_v2  ;;  %v357_v7 = vpack.c.bf16 %v347_v6, %v347_v6  ;;  %v755_v8 = vld [vmem:[%s330_s19] ss:$0 sm:$0xff] }
  0x1b   : > { %v863_v27 = vld [vmem:[%s1013_s10] sm:$0xff]  }
  0x1d   : > { %787 = vmatpush3.bf16.msra.mxu0 %v860_v3  ;;  %v545_v39 = vld [vmem:[#allocation2] sm:$0xff] }
  0x1e   : > { %788 = vmatprep.subr.bf16.mxu0 %v911_v2 }
  0x21   : > { %789 = vmatpush3.bf16.msra.mxu0 %v861_v4 }
  0x22   : > { %790 = vmatprep.subr.bf16.mxu0 %v911_v2 }
  0x25   : > { %791 = vmatpush3.bf16.msra.mxu0 %v862_v5 }
  0x26   : > { %808 = vmatprep.subr.bf16.mxu0 %v911_v2 }
  0x28   : > { %793 = vmatmul.mubr.msk.bf16.vlgmr.msra.gmra.mxu0 %vm388_vm2, %v357_v7 }
  0x29   : > { %810 = vmatprep.mubr.msk.bf16.mxu0 %vm912_vm1, %v911_v2  ;;  %809 = vmatpush3.bf16.msra.mxu0 %v863_v27 }
  0xe8   : > { %v426_v9 = vpop.f32.mrf.mxu0 }
  0xe9   : > { %v427_v10 = vadd.f32 %v755_v8, %v426_v9 }
  0xea   : > { %v794_v11 = vpop.f32.mrf.mxu0 }
  0xeb   : > { %v432_v12 = vpack.c.bf16 %v427_v10, %v427_v10 }
  0xec   : > { %v429_v13 = vpop.f32.mrf.mxu0 }
  0xed   : > { %434 = vrot.lane.b32.xlu0 %v432_v12, %s913_s11 }
  0xee   : > { %v795_v14 = vpop.f32.mrf.mxu0 }
 0x15f   : > { %v435_v15 = vpop.permute.xlu0 %434 }
 0x160   : > { %v441_v16 = vsel %vm436_vm3, %v435_v15, 0 }
 0x161   : > { %797 = vmatpush3.bf16.xpose.msra.mxu1 %v441_v16 }
 0x162   : > { %802 = vmatprep.subr.bf16.mxu1 %v911_v2 }
 0x168   : > { %799 = vmatmul.mubr.msk.bf16.vlgmr.msra.gmra.mxu1 %vm436_vm3, %v432_v12 }
 0x169   : > { %804 = vmatprep.mubr.msk.bf16.mxu1 %vm912_vm1, %v911_v2 }
 0x228   : > { %v477_v17 = vpop.f32.mrf.mxu1 }
 0x229   : > { %v484_v18 = vsel %vm483_vm4, %v477_v17, -inf }
 0x22a   : > { %485 = vmax.xlane.f32.xlu0 %v484_v18  ;;  %v800_v19 = vpop.f32.mrf.mxu1 }
 0x22c   : > { %v480_v20 = vpop.f32.mrf.mxu1 }
 0x22e   : > { %v801_v21 = vpop.f32.mrf.mxu1 }
 0x2b3   : > { %v486_v22 = vpop.xlane.xlu0 %485 }
 0x2b4   : > { %v487_v23 = vsub.f32 %v477_v17, %v486_v22 }
 0x2b6   : > { %v488_v24 = vmul.f32 1.442695, %v487_v23 }
 0x2b8   : > { %864 = vpow2.f32 %v488_v24 }
 0x2c5   : > { %v865_v25 = vpop.eup %864 }
 0x2c6   : > { %v490_v26 = vsel %vm483_vm4, %v865_v25, 0.0 }
 0x2c7   : > { %491 = vadd.xlane.f32.xlu1 %v490_v26 }
 0x2d8   : > { %496 = vrot.lane.b32.xlu1 %v432_v12, %s914_s8 }
 0x350   : > { %v492_v28 = vpop.xlane.xlu1 %491 }
 0x351   : > { %866 = vrcp.f32 %v492_v28 }
 0x354   : > { %v497_v29 = vpop.permute.xlu1 %496 }
 0x355   : > { %v503_v30 = vsel %vm501_vm5, %v497_v29, 0 }
 0x356   : > { %803 = vmatpush3.bf16.msra.mxu1 %v503_v30 }
 0x35e   : > { %v867_v31 = vpop.eup %866 }
 0x35f   : > { %v494_v32 = vmul.f32 %v867_v31, %v865_v25 }
 0x361   : > { %v495_v33 = vpack.c.bf16 %v494_v32, %v494_v32 }
 0x363   : > { %805 = vmatmul.mubr.msk.bf16.vlgmr.msra.gmra.mxu1 %vm483_vm4, %v495_v33 }
 0x423   : > { %v539_v34 = vpop.f32.mrf.mxu1 }
 0x424   : > { %v546_v35 = vpack.c.bf16 %v539_v34, %v539_v34 }
 0x425   : > { %v806_v36 = vpop.f32.mrf.mxu1 }
 0x426   : > { %811 = vmatmul.mubr.msk.bf16.vlgmr.msra.gmra.mxu0 %vm436_vm3, %v546_v35 }
 0x427   : > { %v542_v37 = vpop.f32.mrf.mxu1 }
 0x429   : > { %v807_v38 = vpop.f32.mrf.mxu1 }
 0x4e6   : > { %v592_v40 = vpop.f32.mrf.mxu0 }
 0x4e7   : > { %v598_v41 = vadd.f32 %v592_v40, %v545_v39 }
 0x4e8   : > { %v812_v42 = vpop.f32.mrf.mxu0  ;;  %603 = sbr.rel (%p765_p8) target bundleno = 1578 (0x62a), region = 56 }
 0x4e9   : > { %599 = vst.msk [vmem:[#allocation2] sm:$0xff] %vm388_vm2, %v598_v41 }
 0x4ea   : > { %v595_v43 = vpop.f32.mrf.mxu0 }
 0x4ec   : > { %v813_v44 = vpop.f32.mrf.mxu0 }
 0x4ed   : > { %v766_v46 = vld [vmem:[%s1069_s4] ss:$0 sm:$0xff] }
 0x4ee   : > { %v613_v47 = vld [vmem:[%s994_s12] sm:$0xff] }
 0x4ef   : > { %v767_v60 = vld [vmem:[%s1070_s5] ss:$0 sm:$0xff] }
 0x4f0   : > { %v604_v45 = vld [vmem:[#allocation2] sm:$0xff] }
 0x4f1   : > { %v612_v48 = vadd.f32 %v766_v46, %v604_v45  ;;  %v768_v62 = vld [vmem:[%s1071_s6] ss:$0 sm:$0xff] }
 0x4f3   : > { %v614_v49 = vadd.f32 %v613_v47, %v612_v48 }
 0x4f5   : > { %v617_v50 = vsel %vm388_vm2, %v614_v49, 0.0 }
 0x4f6   : > { %618 = vadd.xlane.f32.xlu0 %v617_v50 }
 0x57f   : > { %v619_v51 = vpop.xlane.xlu0 %618 }
 0x580   : > { %v621_v52 = vmul.f32 0.015625, %v619_v51 }
 0x582   : > { %v622_v53 = vsub.f32 %v614_v49, %v621_v52 }
 0x584   : > { %v623_v54 = vmul.f32 %v622_v53, %v622_v53 }
 0x586   : > { %v624_v55 = vsel %vm388_vm2, %v623_v54, 0.0 }
 0x587   : > { %625 = vadd.xlane.f32.xlu0 %v624_v55 }
 0x610   : > { %v626_v56 = vpop.xlane.xlu0 %625 }
 0x611   : > { %v627_v57 = vmul.f32 0.015625, %v626_v56 }
 0x613   : > { %v628_v58 = vadd.f32 1e-05, %v627_v57 }
 0x615   : > { %868 = vrsqrt.f32 %v628_v58 }
 0x622   : > { %v869_v59 = vpop.eup %868 }
 0x623   : > { %v630_v61 = vmul.f32 %v869_v59, %v622_v53 }
 0x625   : > { %v637_v63 = vmul.f32 %v767_v60, %v630_v61 }
 0x627   : > { %v644_v0 = vadd.f32 %v768_v62, %v637_v63 }
 0x629   : > { %645 = vst.msk [vmem:[%s1008_s23] sm:$0xff] %vm388_vm2, %v644_v0 }
 0x62a PF: > { %s17_s28 = sadd.s32 1, %s908_s28   ;;  %s1074_s17 = sld [smem:[#allocation3_spill]] }
 0x62b   : > { %p14_p9 = scmp.ge.s32.totalorder %s17_s28, 10   ;;  %s1075_s24 = smov %s900_s26 }
 0x62c   : > { %s1076_s25 = smov %s904_s27  ;;  %s1077_s26 = smov %s1080_s29 }
 0x62d   :  { %16 = sbr.rel (!%p14_p9) target bundleno = 3 (0x3), region = 95 }
 0x630   : > { %s1078_s27 = smov %s1074_s17 }

// kernel: transformer_forward.10
= control target key start
LH: loop header
LB: loop body
LE: loop exit
PB: predicated region body
PF: predicated region fallthrough
CT: control target
= control target key end

     0   :  { %s1092_s27 = smov 0   ;;  %s1094_s28 = smov 0   ;;  %s1220_s0 = inlined_call_operand.vmem [shape: f32[2,8,64], index: 0, kind: input, shape index: {}]   ;;  %s1221_s1 = inlined_call_operand.vmem [shape: f32[2,8,64], index: 1, kind: input, shape index: {}]   ;;  %s1222_s2 = inlined_call_operand.vmem [shape: bf16[4,64,48], index: 2, kind: input, shape index: {}]   ;;  %s1223_s3 = inlined_call_operand.vmem [shape: f32[4,1,48], index: 3, kind: input, shape index: {}]   ;;  %s1224_s4 = inlined_call_operand.vmem [shape: bf16[4,16,64], index: 4, kind: input, shape index: {}]   ;;  %s1225_s5 = inlined_call_operand.vmem [shape: f32[1,64], index: 5, kind: input, shape index: {}]   ;;  %s1226_s6 = inlined_call_operand.vmem [shape: f32[1,64], index: 6, kind: input, shape index: {}]   ;;  %s1227_s7 = inlined_call_operand.vmem [shape: f32[1,64], index: 7, kind: input, shape index: {}]   ;;  %s1228_s8 = inlined_call_operand.vmem [shape: f32[2,8,64], index: 8, kind: output, shape index: {}]  }
   0x1   :  { %1229 = sst [smem:[#allocation5_spill]] %s1220_s0  ;;  %s1096_s29 = smov 0  }
   0x2   :  { %s1098_s30 = smov 0   ;;  %s1100_s9 = smov 0  }
   0x3 LB: > { %s27_s10 = sadd.s32 1, %s1033_s29  ;;  %s30_s11 = sadd.s32 1, %s1037_s30  ;;  %s1041_s9 = sphi %s1100_s9, %s18_s9   ;;  %s1037_s30 = sphi %s1098_s30, %s1238_s30   ;;  %s1033_s29 = sphi %s1096_s29, %s1237_s29   ;;  %s1029_s28 = sphi %s1094_s28, %s1236_s28   ;;  %s1025_s27 = sphi %s1092_s27, %s1235_s27  }
   0x4   : > { %p28_p0 = scmp.ge.s32.totalorder %s27_s10, 4  ;;  %p862_p1 = scmp.ge.s32.totalorder %s1041_s9, 1 }
   0x5   : > { %p310_p2 = scmp.lt.s32.totalorder %s1041_s9, 9 }
   0x6   : > { %s1240_s10 = smov (%p28_p0, %s27_s10), 0  ;;  %s1242_s11 = smov (!%p28_p0, %s30_s11), %s1037_s30 }
   0x7   : > { %1230 = sst [smem:[#allocation3_spill]] %s1240_s10  ;;  %p311_p3 = pnand %p862_p1, %p310_p2 }
   0x8   : > { %p32_p4 = scmp.ge.s32.totalorder %s1242_s11, 2  ;;  %p359_p5 = scmp.lt.s32.totalorder (!%p311_p3), %s1029_s28, 1 }
   0x9   : > { %314 = sbr.rel (%p311_p3) target bundleno = 1577 (0x629), region = 52  ;;  %p367_p6 = scmp.lt.s32.totalorder (!%p311_p3), %s1025_s27, 3 }
   0xa   : > { %s1244_s11 = smov (%p32_p4, %s1242_s11), 0  ;;  %s1232_s0 = sld [smem:[#allocation5_spill]] (!%p311_p3) }
   0xb   : > { %1231 = sst [smem:[#allocation4_spill]] %s1244_s11  ;;  %p870_p7 = scmp.ne.s32.totalorder (!%p311_p3), %s1025_s27, 0 }
   0xe   : > { %s1246_s28 = smov (!%p359_p5, %s1029_s28), 1 }
   0xf   : > { %s1126_s12 = scalar_select %p367_p6, %s1025_s27, 3 }
  0x10   : > { %s1128_s13 = sshll.u32 %s1246_s28, 3  ;;  %388 = sbr.rel (%p870_p7) target bundleno = 23 (0x17), region = 56 }
  0x11   : > { %s1134_s16 = scalar_lea.vmem %s1232_s0, %s1128_s13  ;;  %s366_s19 = scalar_lea.vmem %s1221_s1, %s1128_s13 }
  0x12   : > { %s888_s20 = sshll.u32 %s1126_s12, 5  ;;  %s374_s23 = scalar_lea.vmem %s1223_s3, %s1126_s12 }
  0x13   : > { %s371_s26 = scalar_lea.vmem %s1222_s2, %s888_s20  ;;  %s889_s28 = sshll.u32 %s1126_s12, 3 }
  0x14   : > { %s1152_s15 = scalar_lea.vmem %s1224_s4, %s889_s28  ;;  %s383_s17 = scalar_lea.vmem %s1228_s8, %s1128_s13 }
  0x15   : > { %vm389_vm0 = vcmask 523264   ;;  %v1043_v0 = vmov 0.0  }
  0x16   : > { %390 = vst.msk [vmem:[#allocation2] sm:$0xff] %vm389_vm0, %v1043_v0 }
  0x17 PF: > { %v992_v1 = vld [vmem:[%s371_s26 + $0x18] sm:$0xff]   ;;  %v993_v2 = vld [vmem:[%s371_s26 + $0x10] sm:$0xff]   ;;  %s1044_s18 = smov 112   ;;  %v994_v3 = vld [vmem:[%s371_s26 + $0x8] sm:$0xff]   ;;  %v1045_v4 = vmov 0.0   ;;  %vm1046_vm1 = vmmov 0  }
  0x18   : > { %484 = vrot.lane.b32.xlu0 %v992_v1, %s1044_s18  ;;  %918 = vmatprep.subr.bf16.mxu1 %v1045_v4  ;;  %v995_v5 = vld [vmem:[%s371_s26] sm:$0xff]   ;;  %vm433_vm2 = vcmask 523264   ;;  %vm538_vm3 = vcmask 130048   ;;  %vm585_vm4 = vcmask 64512   ;;  %vm604_vm5 = vcmask 1043456   ;;  %p882_p8 = scmp.ne.s32.totalorder %s1025_s27, 3 }
  0x19   : > { %906 = vmatprep.subr.bf16.mxu0 %v1045_v4  ;;  %926 = vmatprep.mubr.msk.bf16.mxu1 %vm1046_vm1, %v1045_v4  ;;  %v871_v6 = vld [vmem:[%s374_s23] ss:$0 sm:$0xff] }
  0x1a   : > { %480 = vrot.lane.b32.xlu1 %v994_v3, %s1044_s18  ;;  %907 = vmatpush3.bf16.msra.mxu0 %v992_v1  ;;  %v391_v7 = vld [vmem:[%s1134_s16] sm:$0xff] }
  0x1b   : > { %908 = vmatprep.subr.bf16.mxu0 %v1045_v4  ;;  %914 = vmatprep.mubr.msk.bf16.mxu0 %vm1046_vm1, %v1045_v4  ;;  %v402_v8 = vpack.c.bf16 %v391_v7, %v391_v7  ;;  %v401_v12 = vld [vmem:[%s366_s19] sm:$0xff] }
  0x1c   : > { %482 = vrot.lane.b32.xlu0 %v993_v2, %s1044_s18  ;;  %v477_v14 = vpack.c.bf16 %v401_v12, %v401_v12  ;;  %v996_v39 = vld [vmem:[%s1152_s15] sm:$0xff]  }
  0x1d   : > { %v648_v51 = vld [vmem:[#allocation2] sm:$0xff] }
  0x1e   : > { %478 = vrot.lane.b32.xlu1 %v995_v5, %s1044_s18  ;;  %909 = vmatpush3.bf16.msra.mxu0 %v993_v2 }
  0x1f   : > { %910 = vmatprep.subr.bf16.mxu0 %v1045_v4 }
  0x20   : > { %490 = vrot.lane.b32.xlu0 %v871_v6, %s1044_s18 }
  0x22   : > { %911 = vmatpush3.bf16.msra.mxu0 %v994_v3 }
  0x23   : > { %912 = vmatprep.subr.bf16.mxu0 %v1045_v4 }
  0x26   : > { %913 = vmatpush3.bf16.msra.mxu0 %v995_v5 }
  0x27   : > { %930 = vmatprep.subr.bf16.mxu0 %v1045_v4 }
  0x29   : > { %915 = vmatmul.mubr.msk.bf16.vlgmr.msra.gmra.mxu0 %vm433_vm2, %v402_v8 }
  0x2a   : > { %932 = vmatprep.mubr.msk.bf16.mxu0 %vm1046_vm1, %v1045_v4 }
  0x8a   : > { %v485_v9 = vpop.permute.xlu0 %484 }
  0x8b   : > { %919 = vmatpush3.bf16.msra.mxu1 %v485_v9 }
  0x8c   : > { %920 = vmatprep.subr.bf16.mxu1 %v1045_v4  ;;  %v481_v11 = vpop.permute.xlu1 %480 }
  0x8e   : > { %v483_v10 = vpop.permute.xlu0 %482 }
  0x8f   : > { %921 = vmatpush3.bf16.msra.mxu1 %v483_v10 }
  0x90   : > { %922 = vmatprep.subr.bf16.mxu1 %v1045_v4  ;;  %v479_v13 = vpop.permute.xlu1 %478 }
  0x92   : > { %v491_v19 = vpop.permute.xlu0 %490 }
  0x93   : > { %923 = vmatpush3.bf16.msra.mxu1 %v481_v11 }
  0x94   : > { %924 = vmatprep.subr.bf16.mxu1 %v1045_v4 }
  0x97   : > { %925 = vmatpush3.bf16.msra.mxu1 %v479_v13 }
  0x98   : > { %936 = vmatprep.subr.bf16.mxu1 %v1045_v4 }
  0x9a   : > { %927 = vmatmul.mubr.msk.bf16.vlgmr.msra.gmra.mxu1 %vm433_vm2, %v477_v14 }
  0x9b   : > { %938 = vmatprep.mubr.msk.bf16.mxu1 %vm1046_vm1, %v1045_v4 }
  0xe9   : > { %v471_v15 = vpop.f32.mrf.mxu0 }
  0xea   : > { %v472_v26 = vadd.f32 %v871_v6, %v471_v15 }
  0xeb   : > { %v916_v16 = vpop.f32.mrf.mxu0 }
  0xec   : > { %v536_v28 = vpack.c.bf16 %v472_v26, %v472_v26 }
  0xed   : > { %v474_v17 = vpop.f32.mrf.mxu0 }
  0xef   : > { %v917_v18 = vpop.f32.mrf.mxu0 }
 0x15a   : > { %v530_v20 = vpop.f32.mrf.mxu1 }
 0x15b   : > { %v531_v21 = vadd.f32 %v530_v20, %v491_v19 }
 0x15c   : > { %v928_v22 = vpop.f32.mrf.mxu1 }
 0x15d   : > { %v537_v23 = vpack.c.bf16 %v531_v21, %v531_v21 }
 0x15e   : > { %v533_v24 = vpop.f32.mrf.mxu1 }
 0x15f   : > { %v543_v25 = vsel %vm538_vm3, %v537_v23, 0 }
 0x160   : > { %v929_v27 = vpop.f32.mrf.mxu1  ;;  %931 = vmatpush3.bf16.xpose.msra.mxu0 %v543_v25 }
 0x161   : > { %942 = vmatprep.subr.bf16.mxu0 %v1045_v4 }
 0x167   : > { %933 = vmatmul.mubr.msk.bf16.vlgmr.msra.gmra.mxu0 %vm538_vm3, %v536_v28 }
 0x168   : > { %944 = vmatprep.mubr.msk.bf16.mxu0 %vm1046_vm1, %v1045_v4  ;;  %943 = vmatpush3.bf16.msra.mxu0 %v996_v39 }
 0x227   : > { %v579_v29 = vpop.f32.mrf.mxu0 }
 0x228   : > { %v586_v30 = vsel %vm585_vm4, %v579_v29, -inf }
 0x229   : > { %587 = vmax.xlane.f32.xlu1 %v586_v30  ;;  %v934_v31 = vpop.f32.mrf.mxu0 }
 0x22b   : > { %v582_v32 = vpop.f32.mrf.mxu0 }
 0x22d   : > { %v935_v33 = vpop.f32.mrf.mxu0 }
 0x2b2   : > { %v588_v34 = vpop.xlane.xlu1 %587 }
 0x2b3   : > { %v589_v35 = vsub.f32 %v579_v29, %v588_v34 }
 0x2b5   : > { %v590_v36 = vmul.f32 1.442695, %v589_v35 }
 0x2b7   : > { %997 = vpow2.f32 %v590_v36 }
 0x2c4   : > { %v998_v37 = vpop.eup %997 }
 0x2c5   : > { %v592_v38 = vsel %vm585_vm4, %v998_v37, 0.0 }
 0x2c6   : > { %593 = vadd.xlane.f32.xlu0 %v592_v38 }
 0x2dc   : > { %599 = vrot.lane.b32.xlu0 %v537_v23, %s1044_s18 }
 0x34f   : > { %v594_v40 = vpop.xlane.xlu0 %593 }
 0x350   : > { %999 = vrcp.f32 %v594_v40 }
 0x353   : > { %v600_v41 = vpop.permute.xlu0 %599 }
 0x354   : > { %v606_v42 = vsel %vm604_vm5, %v600_v41, 0 }
 0x355   : > { %937 = vmatpush3.bf16.msra.mxu1 %v606_v42 }
 0x35d   : > { %v1000_v43 = vpop.eup %999 }
 0x35e   : > { %v596_v44 = vmul.f32 %v1000_v43, %v998_v37 }
 0x360   : > { %v597_v45 = vpack.c.bf16 %v596_v44, %v596_v44 }
 0x362   : > { %939 = vmatmul.mubr.msk.bf16.vlgmr.msra.gmra.mxu1 %vm585_vm4, %v597_v45 }
 0x422   : > { %v642_v46 = vpop.f32.mrf.mxu1 }
 0x423   : > { %v649_v47 = vpack.c.bf16 %v642_v46, %v642_v46 }
 0x424   : > { %v940_v48 = vpop.f32.mrf.mxu1 }
 0x425   : > { %945 = vmatmul.mubr.msk.bf16.vlgmr.msra.gmra.mxu0 %vm538_vm3, %v649_v47 }
 0x426   : > { %v645_v49 = vpop.f32.mrf.mxu1 }
 0x428   : > { %v941_v50 = vpop.f32.mrf.mxu1 }
 0x4e5   : > { %v695_v52 = vpop.f32.mrf.mxu0 }
 0x4e6   : > { %v701_v53 = vadd.f32 %v695_v52, %v648_v51 }
 0x4e7   : > { %v946_v54 = vpop.f32.mrf.mxu0  ;;  %706 = sbr.rel (%p882_p8) target bundleno = 1577 (0x629), region = 60 }
 0x4e8   : > { %702 = vst.msk [vmem:[#allocation2] sm:$0xff] %vm433_vm2, %v701_v53 }
 0x4e9   : > { %v698_v55 = vpop.f32.mrf.mxu0 }
 0x4eb   : > { %v947_v56 = vpop.f32.mrf.mxu0 }
 0x4ec   : > { %v883_v58 = vld [vmem:[%s1225_s5] ss:$0 sm:$0xff] }
 0x4ed   : > { %v716_v59 = vld [vmem:[%s1134_s16] sm:$0xff] }
 0x4ee   : > { %v884_v8 = vld [vmem:[%s1226_s6] ss:$0 sm:$0xff] }
 0x4ef   : > { %v707_v57 = vld [vmem:[#allocation2] sm:$0xff] }
 0x4f0   : > { %v715_v60 = vadd.f32 %v883_v58, %v707_v57  ;;  %v885_v10 = vld [vmem:[%s1227_s7] ss:$0 sm:$0xff] }
 0x4f2   : > { %v717_v61 = vadd.f32 %v716_v59, %v715_v60 }
 0x4f4   : > { %v720_v62 = vsel %vm433_vm2, %v717_v61, 0.0 }
 0x4f5   : > { %721 = vadd.xlane.f32.xlu0 %v720_v62 }
 0x57e   : > { %v722_v63 = vpop.xlane.xlu0 %721 }
 0x57f   : > { %v724_v0 = vmul.f32 0.015625, %v722_v63 }
 0x581   : > { %v725_v1 = vsub.f32 %v717_v61, %v724_v0 }
 0x583   : > { %v726_v2 = vmul.f32 %v725_v1, %v725_v1 }
 0x585   : > { %v727_v3 = vsel %vm433_vm2, %v726_v2, 0.0 }
 0x586   : > { %728 = vadd.xlane.f32.xlu0 %v727_v3 }
 0x60f   : > { %v729_v4 = vpop.xlane.xlu0 %728 }
 0x610   : > { %v730_v5 = vmul.f32 0.015625, %v729_v4 }
 0x612   : > { %v731_v6 = vadd.f32 1e-05, %v730_v5 }
 0x614   : > { %1001 = vrsqrt.f32 %v731_v6 }
 0x621   : > { %v1002_v7 = vpop.eup %1001 }
 0x622   : > { %v733_v9 = vmul.f32 %v1002_v7, %v725_v1 }
 0x624   : > { %v740_v11 = vmul.f32 %v884_v8, %v733_v9 }
 0x626   : > { %v747_v12 = vadd.f32 %v885_v10, %v740_v11 }
 0x628   : > { %748 = vst.msk [vmem:[%s383_s17] sm:$0xff] %vm433_vm2, %v747_v12 }
 0x629 PF: > { %s18_s9 = sadd.s32 1, %s1041_s9   ;;  %s1233_s23 = sld [smem:[#allocation3_spill]] }
 0x62a   : > { %p15_p9 = scmp.ge.s32.totalorder %s18_s9, 10   ;;  %s1234_s24 = sld [smem:[#allocation4_spill]] }
 0x62b   : > { %s1235_s27 = smov %s1033_s29  ;;  %s1236_s28 = smov %s1037_s30 }
 0x62c   :  { %17 = sbr.rel (!%p15_p9) target bundleno = 3 (0x3), region = 102 }
 0x62f   : > { %s1237_s29 = smov %s1233_s23 }
 0x630   : > { %s1238_s30 = smov %s1234_s24 }

// kernel: transformer_forward.15
= control target key start
LH: loop header
LB: loop body
LE: loop exit
PB: predicated region body
PF: predicated region fallthrough
CT: control target
= control target key end

     0   :  { %v195_v0 = vmov 0.0   ;;  %vm196_vm0 = vmmov 0   ;;  %vm63_vm1 = vcmask 523264   ;;  %vm110_vm2 = vcmask 261120   ;;  %s266_s1 = inlined_call_operand.vmem [shape: bf16[64,32], index: 1, kind: input, shape index: {}]   ;;  %s267_s0 = inlined_call_operand.vmem [shape: f32[16,64], index: 0, kind: input, shape index: {}]   ;;  %s268_s2 = inlined_call_operand.vmem [shape: f32[1,32], index: 2, kind: input, shape index: {}]   ;;  %s269_s3 = inlined_call_operand.vmem [shape: f32[1,32], index: 3, kind: input, shape index: {}]   ;;  %s270_s4 = inlined_call_operand.vmem [shape: f32[1,32], index: 4, kind: input, shape index: {}]   ;;  %s271_s5 = inlined_call_operand.vmem [shape: f32[16,32], index: 5, kind: output, shape index: {}]  }
   0x1   :  { %173 = vmatprep.subr.bf16.mxu0 %v195_v0  ;;  %v187_v1 = vld [vmem:[%s266_s1 + $0x18] sm:$0xff]   ;;  %181 = vmatprep.mubr.msk.bf16.mxu0 %vm196_vm0, %v195_v0  ;;  %v188_v2 = vld [vmem:[%s266_s1 + $0x10] sm:$0xff]   ;;  %v189_v3 = vld [vmem:[%s266_s1 + $0x8] sm:$0xff]  }
   0x2   :  { %174 = vmatpush3.bf16.msra.mxu0 %v187_v1  ;;  %v190_v4 = vld [vmem:[%s266_s1] sm:$0xff]   ;;  %v22_v6 = vld [vmem:[%s267_s0 + $0x8] sm:$0xff] }
   0x3   :  { %175 = vmatprep.subr.bf16.mxu0 %v195_v0  ;;  %v21_v5 = vld [vmem:[%s267_s0] sm:$0xff] }
   0x4   :  { %v23_v7 = vpack.c.bf16 %v22_v6, %v21_v5  ;;  %v160_v8 = vld [vmem:[%s268_s2] ss:$0 sm:$0xff] }
   0x5   :  { %v166_v34 = vld [vmem:[%s269_s3] ss:$0 sm:$0xff] }
   0x6   :  { %176 = vmatpush3.bf16.msra.mxu0 %v188_v2  ;;  %v167_v36 = vld [vmem:[%s270_s4] ss:$0 sm:$0xff] }
   0x7   :  { %177 = vmatprep.subr.bf16.mxu0 %v195_v0 }
   0xa   :  { %178 = vmatpush3.bf16.msra.mxu0 %v189_v3 }
   0xb   :  { %179 = vmatprep.subr.bf16.mxu0 %v195_v0 }
   0xe   :  { %180 = vmatpush3.bf16.msra.mxu0 %v190_v4 }
  0x11   :  { %182 = vmatmul.mubr.msk.bf16.vlgmr.msra.gmra.mxu0 %vm63_vm1, %v23_v7 }
  0xd1   :  { %v101_v9 = vpop.f32.mrf.mxu0 }
  0xd2   :  { %v102_v10 = vadd.f32 %v160_v8, %v101_v9 }
  0xd3   :  { %v183_v11 = vpop.f32.mrf.mxu0 }
  0xd4   :  { %v111_v12 = vsel %vm110_vm2, %v102_v10, 0.0 }
  0xd5   :  { %112 = vadd.xlane.f32.xlu0 %v111_v12  ;;  %v104_v13 = vpop.f32.mrf.mxu0 }
  0xd6   :  { %v105_v14 = vadd.f32 %v160_v8, %v104_v13 }
  0xd7   :  { %v184_v15 = vpop.f32.mrf.mxu0 }
  0xd8   :  { %v114_v16 = vsel %vm110_vm2, %v105_v14, 0.0 }
  0xd9   :  { %115 = vadd.xlane.f32.xlu0 %v114_v16 }
 0x15e   :  { %v113_v17 = vpop.xlane.xlu0 %112 }
 0x15f   :  { %v118_v18 = vmul.f32 0.03125, %v113_v17 }
 0x161   :  { %v120_v19 = vsub.f32 %v102_v10, %v118_v18 }
 0x162   :  { %v116_v20 = vpop.xlane.xlu0 %115 }
 0x163   :  { %v119_v21 = vmul.f32 0.03125, %v116_v20  ;;  %v122_v22 = vmul.f32 %v120_v19, %v120_v19 }
 0x165   :  { %v121_v23 = vsub.f32 %v105_v14, %v119_v21  ;;  %v124_v24 = vsel %vm110_vm2, %v122_v22, 0.0 }
 0x166   :  { %125 = vadd.xlane.f32.xlu1 %v124_v24 }
 0x167   :  { %v123_v25 = vmul.f32 %v121_v23, %v121_v23 }
 0x169   :  { %v127_v26 = vsel %vm110_vm2, %v123_v25, 0.0 }
 0x16a   :  { %128 = vadd.xlane.f32.xlu1 %v127_v26 }
 0x1ef   :  { %v126_v27 = vpop.xlane.xlu1 %125 }
 0x1f0   :  { %v130_v28 = vmul.f32 0.03125, %v126_v27 }
 0x1f2   :  { %v132_v29 = vadd.f32 1e-05, %v130_v28 }
 0x1f3   :  { %v129_v30 = vpop.xlane.xlu1 %128 }
 0x1f4   :  { %191 = vrsqrt.f32 %v132_v29  ;;  %v131_v31 = vmul.f32 0.03125, %v129_v30 }
 0x1f6   :  { %v133_v32 = vadd.f32 1e-05, %v131_v31 }
 0x1f8   :  { %193 = vrsqrt.f32 %v133_v32 }
 0x201   :  { %v192_v33 = vpop.eup %191 }
 0x202   :  { %v136_v35 = vmul.f32 %v192_v33, %v120_v19 }
 0x204   :  { %v144_v37 = vmul.f32 %v166_v34, %v136_v35 }
 0x205   :  { %v194_v38 = vpop.eup %193 }
 0x206   :  { %v152_v39 = vadd.f32 %v167_v36, %v144_v37  ;;  %v137_v40 = vmul.f32 %v194_v38, %v121_v23 }
 0x208   :  { %154 = vst.msk [vmem:[%s271_s5] sm:$0xff] %vm110_vm2, %v152_v39  ;;  %v145_v41 = vmul.f32 %v166_v34, %v137_v40 }
 0x20a   :  { %v153_v42 = vadd.f32 %v167_v36, %v145_v41 }
 0x20c   :  { %155 = vst.msk [vmem:[%s271_s5 + $0x8] sm:$0xff] %vm110_vm2, %v153_v42 }

// kernel: transformer_forward.11
= control target key start
LH: loop header
LB: loop body
LE: loop exit
PB: predicated region body
PF: predicated region fallthrough
CT: control target
= control target key end

     0   :  { %v2820_v3 = vmov 0   ;;  %vm498_vm0 = vcmask 523264   ;;  %s3594_s1 = inlined_call_operand.vmem [shape: bf16[64,2048], index: 1, kind: input, shape index: {}]   ;;  %s3595_s0 = inlined_call_operand.vmem [shape: f32[16,64], index: 0, kind: input, shape index: {}]   ;;  %s3596_s3 = inlined_call_operand.vmem [shape: bf16[2048,64], index: 3, kind: input, shape index: {}]   ;;  %s3597_s2 = inlined_call_operand.vmem [shape: f32[1,2048], index: 2, kind: input, shape index: {}]   ;;  %s3598_s4 = inlined_call_operand.vmem [shape: f32[1,64], index: 4, kind: input, shape index: {}]   ;;  %s3599_s5 = inlined_call_operand.vmem [shape: f32[1,64], index: 5, kind: input, shape index: {}]   ;;  %s3600_s6 = inlined_call_operand.vmem [shape: f32[1,64], index: 6, kind: input, shape index: {}]   ;;  %s3601_s7 = inlined_call_operand.vmem [shape: f32[16,64], index: 7, kind: output, shape index: {}]  }
   0x1   :  { %v78_v0 = vld [vmem:[%s3594_s1 + $0x180] sm:$0xff]  ;;  %v79_v2 = vld [vmem:[%s3594_s1 + $0x188] sm:$0xff]  ;;  %534 = vmatprep.mubr.bf16.mxu0 %v2820_v3  ;;  %577 = vmatprep.mubr.bf16.mxu1 %v2820_v3  ;;  %v80_v31 = vld [vmem:[%s3594_s1 + $0x190] sm:$0xff] }
   0x2   :  { %v86_v1 = vld [vmem:[%s3594_s1 + $0x1c0] sm:$0xff]  ;;  %v87_v5 = vld [vmem:[%s3594_s1 + $0x1c8] sm:$0xff]  ;;  %v88_v32 = vld [vmem:[%s3594_s1 + $0x1d0] sm:$0xff] }
   0x3   :  { %v2355_v4 = vcombine.high %v78_v0, %v86_v1  ;;  %v2354_v6 = vcombine.low %v78_v0, %v86_v1  ;;  %v62_v7 = vld [vmem:[%s3594_s1 + $0x100] sm:$0xff]  ;;  %v2357_v9 = vcombine.high %v79_v2, %v87_v5  ;;  %v2356_v10 = vcombine.low %v79_v2, %v87_v5  ;;  %v63_v12 = vld [vmem:[%s3594_s1 + $0x108] sm:$0xff]  ;;  %v81_v33 = vld [vmem:[%s3594_s1 + $0x198] sm:$0xff] }
   0x4   :  { %v70_v8 = vld [vmem:[%s3594_s1 + $0x140] sm:$0xff]  ;;  %v71_v13 = vld [vmem:[%s3594_s1 + $0x148] sm:$0xff]  ;;  %v89_v34 = vld [vmem:[%s3594_s1 + $0x1d8] sm:$0xff]  ;;  %v2359_v39 = vcombine.high %v80_v31, %v88_v32  ;;  %v2358_v46 = vcombine.low %v80_v31, %v88_v32 }
   0x5   :  { %v2339_v11 = vcombine.high %v62_v7, %v70_v8  ;;  %v46_v14 = vld [vmem:[%s3594_s1 + $0x80] sm:$0xff]  ;;  %510 = vmatprep.subr.bf16.mxu0 %v2355_v4  ;;  %v2341_v15 = vcombine.high %v63_v12, %v71_v13  ;;  %v47_v17 = vld [vmem:[%s3594_s1 + $0x88] sm:$0xff]  ;;  %553 = vmatprep.subr.bf16.mxu1 %v2357_v9  ;;  %v2338_v19 = vcombine.low %v62_v7, %v70_v8  ;;  %v64_v41 = vld [vmem:[%s3594_s1 + $0x110] sm:$0xff] }
   0x6   :  { %v54_v16 = vld [vmem:[%s3594_s1 + $0xc0] sm:$0xff]  ;;  %v55_v18 = vld [vmem:[%s3594_s1 + $0xc8] sm:$0xff]  ;;  %511 = vmatpush1.bf16.msra.mxu0 %v2354_v6  ;;  %554 = vmatpush1.bf16.msra.mxu1 %v2356_v10  ;;  %v2340_v20 = vcombine.low %v63_v12, %v71_v13  ;;  %v2361_v40 = vcombine.high %v81_v33, %v89_v34  ;;  %v72_v42 = vld [vmem:[%s3594_s1 + $0x150] sm:$0xff]  ;;  %v2360_v47 = vcombine.low %v81_v33, %v89_v34 }
   0x7   :  { %512 = vmatprep.subr.bf16.mxu0 %v2339_v11  ;;  %v2323_v21 = vcombine.high %v46_v14, %v54_v16  ;;  %555 = vmatprep.subr.bf16.mxu1 %v2341_v15  ;;  %v2325_v22 = vcombine.high %v47_v17, %v55_v18  ;;  %v30_v23 = vld [vmem:[%s3594_s1] sm:$0xff]  ;;  %v31_v25 = vld [vmem:[%s3594_s1 + $0x8] sm:$0xff]  ;;  %v2322_v27 = vcombine.low %v46_v14, %v54_v16  ;;  %v65_v44 = vld [vmem:[%s3594_s1 + $0x118] sm:$0xff] }
   0x8   :  { %v38_v24 = vld [vmem:[%s3594_s1 + $0x40] sm:$0xff]  ;;  %v39_v26 = vld [vmem:[%s3594_s1 + $0x48] sm:$0xff]  ;;  %v2324_v28 = vcombine.low %v47_v17, %v55_v18  ;;  %v73_v45 = vld [vmem:[%s3594_s1 + $0x158] sm:$0xff]  ;;  %v2343_v48 = vcombine.high %v64_v41, %v72_v42  ;;  %v2342_v54 = vcombine.low %v64_v41, %v72_v42 }
   0x9   :  { %v2307_v29 = vcombine.high %v30_v23, %v38_v24  ;;  %v2309_v30 = vcombine.high %v31_v25, %v39_v26  ;;  %v2306_v35 = vcombine.low %v30_v23, %v38_v24  ;;  %v27_v36 = vld [vmem:[%s3595_s0] sm:$0xff]  ;;  %v28_v37 = vld [vmem:[%s3595_s0 + $0x8] sm:$0xff]  ;;  %v2308_v38 = vcombine.low %v31_v25, %v39_v26  ;;  %v48_v50 = vld [vmem:[%s3594_s1 + $0x90] sm:$0xff] }
   0xa   :  { %513 = vmatpush1.bf16.msra.mxu0 %v2338_v19  ;;  %556 = vmatpush1.bf16.msra.mxu1 %v2340_v20  ;;  %v2935_v43 = vpack.c.bf16 %v28_v37, %v27_v36  ;;  %v2345_v49 = vcombine.high %v65_v44, %v73_v45  ;;  %v56_v51 = vld [vmem:[%s3594_s1 + $0xd0] sm:$0xff]  ;;  %v49_v52 = vld [vmem:[%s3594_s1 + $0x98] sm:$0xff]  ;;  %v2344_v55 = vcombine.low %v65_v44, %v73_v45  ;;  %v82_v63 = vld [vmem:[%s3594_s1 + $0x1a0] sm:$0xff] }
   0xb   :  { %514 = vmatprep.subr.bf16.mxu0 %v2323_v21  ;;  %557 = vmatprep.subr.bf16.mxu1 %v2325_v22  ;;  %v57_v53 = vld [vmem:[%s3594_s1 + $0xd8] sm:$0xff]  ;;  %v2327_v56 = vcombine.high %v48_v50, %v56_v51  ;;  %v32_v57 = vld [vmem:[%s3594_s1 + $0x10] sm:$0xff]  ;;  %v2326_v62 = vcombine.low %v48_v50, %v56_v51  ;;  %v90_v2 = vld [vmem:[%s3594_s1 + $0x1e0] sm:$0xff] }
   0xc   :  { %v40_v58 = vld [vmem:[%s3594_s1 + $0x50] sm:$0xff]  ;;  %v2329_v59 = vcombine.high %v49_v52, %v57_v53  ;;  %v33_v60 = vld [vmem:[%s3594_s1 + $0x18] sm:$0xff]  ;;  %v2328_v0 = vcombine.low %v49_v52, %v57_v53  ;;  %v83_v5 = vld [vmem:[%s3594_s1 + $0x1a8] sm:$0xff]  ;;  %v2363_v10 = vcombine.high %v82_v63, %v90_v2  ;;  %v2362_v15 = vcombine.low %v82_v63, %v90_v2 }
   0xd   :  { %v41_v61 = vld [vmem:[%s3594_s1 + $0x58] sm:$0xff]  ;;  %v2311_v1 = vcombine.high %v32_v57, %v40_v58  ;;  %v91_v6 = vld [vmem:[%s3594_s1 + $0x1e8] sm:$0xff]  ;;  %v2310_v7 = vcombine.low %v32_v57, %v40_v58  ;;  %v66_v8 = vld [vmem:[%s3594_s1 + $0x120] sm:$0xff] }
   0xe   :  { %515 = vmatpush1.bf16.msra.mxu0 %v2322_v27  ;;  %558 = vmatpush1.bf16.msra.mxu1 %v2324_v28  ;;  %v2313_v4 = vcombine.high %v33_v60, %v41_v61  ;;  %v2312_v9 = vcombine.low %v33_v60, %v41_v61  ;;  %v74_v11 = vld [vmem:[%s3594_s1 + $0x160] sm:$0xff]  ;;  %v2365_v12 = vcombine.high %v83_v5, %v91_v6  ;;  %v67_v13 = vld [vmem:[%s3594_s1 + $0x128] sm:$0xff]  ;;  %v84_v32 = vld [vmem:[%s3594_s1 + $0x1b0] sm:$0xff] }
   0xf   :  { %516 = vmatprep.subr.bf16.mxu0 %v2307_v29  ;;  %559 = vmatprep.subr.bf16.mxu1 %v2309_v30  ;;  %v75_v14 = vld [vmem:[%s3594_s1 + $0x168] sm:$0xff]  ;;  %v50_v16 = vld [vmem:[%s3594_s1 + $0xa0] sm:$0xff]  ;;  %v2364_v17 = vcombine.low %v83_v5, %v91_v6  ;;  %v2347_v18 = vcombine.high %v66_v8, %v74_v11  ;;  %v2346_v23 = vcombine.low %v66_v8, %v74_v11  ;;  %v92_v33 = vld [vmem:[%s3594_s1 + $0x1f0] sm:$0xff] }
  0x10   :  { %v58_v19 = vld [vmem:[%s3594_s1 + $0xe0] sm:$0xff]  ;;  %v2349_v20 = vcombine.high %v67_v13, %v75_v14  ;;  %v51_v21 = vld [vmem:[%s3594_s1 + $0xa8] sm:$0xff]  ;;  %v2348_v25 = vcombine.low %v67_v13, %v75_v14  ;;  %v85_v36 = vld [vmem:[%s3594_s1 + $0x1b8] sm:$0xff]  ;;  %v2367_v44 = vcombine.high %v84_v32, %v92_v33 }
  0x11   :  { %v59_v22 = vld [vmem:[%s3594_s1 + $0xe8] sm:$0xff]  ;;  %v34_v24 = vld [vmem:[%s3594_s1 + $0x20] sm:$0xff]  ;;  %v2331_v26 = vcombine.high %v50_v16, %v58_v19  ;;  %v2330_v31 = vcombine.low %v50_v16, %v58_v19  ;;  %v76_v41 = vld [vmem:[%s3594_s1 + $0x170] sm:$0xff] }
  0x12   :  { %517 = vmatpush1.bf16.msra.mxu0 %v2306_v35  ;;  %560 = vmatpush1.bf16.msra.mxu1 %v2308_v38  ;;  %v42_v27 = vld [vmem:[%s3594_s1 + $0x60] sm:$0xff]  ;;  %v2333_v28 = vcombine.high %v51_v21, %v59_v22  ;;  %v35_v29 = vld [vmem:[%s3594_s1 + $0x28] sm:$0xff]  ;;  %v2332_v34 = vcombine.low %v51_v21, %v59_v22  ;;  %v93_v38 = vld [vmem:[%s3594_s1 + $0x1f8] sm:$0xff] }
  0x13   :  { %596 = vmatprep.subr.bf16.mxu0 %v2359_v39  ;;  %639 = vmatprep.subr.bf16.mxu1 %v2361_v40  ;;  %v43_v30 = vld [vmem:[%s3594_s1 + $0x68] sm:$0xff]  ;;  %v2315_v35 = vcombine.high %v34_v24, %v42_v27  ;;  %v2314_v39 = vcombine.low %v34_v24, %v42_v27  ;;  %v68_v40 = vld [vmem:[%s3594_s1 + $0x130] sm:$0xff]  ;;  %v69_v45 = vld [vmem:[%s3594_s1 + $0x138] sm:$0xff]  ;;  %v2368_v51 = vcombine.low %v85_v36, %v93_v38 }
  0x14   :  { %v2317_v37 = vcombine.high %v35_v29, %v43_v30  ;;  %v2316_v42 = vcombine.low %v35_v29, %v43_v30  ;;  %v60_v50 = vld [vmem:[%s3594_s1 + $0xf0] sm:$0xff]  ;;  %v2351_v52 = vcombine.high %v68_v40, %v76_v41  ;;  %v53_v53 = vld [vmem:[%s3594_s1 + $0xb8] sm:$0xff]  ;;  %v2694_v14 = vld [vmem:[%s3596_s3 + $0x68] sm:$0xff]  }
  0x15   :  { %2370 = vmatmul.mubr.msk.bf16.vlgmr.msra.gmra.mxu0 %vm498_vm0, %v2935_v43  ;;  %2371 = vmatmul.mubr.msk.bf16.vlgmr.msra.gmra.mxu1 %vm498_vm0, %v2935_v43  ;;  %v36_v57 = vld [vmem:[%s3594_s1 + $0x30] sm:$0xff]  ;;  %v37_v61 = vld [vmem:[%s3594_s1 + $0x38] sm:$0xff]  ;;  %v2696_v16 = vld [vmem:[%s3596_s3 + $0x28] sm:$0xff]  }
  0x16   :  { %597 = vmatpush1.bf16.msra.mxu0 %v2358_v46  ;;  %640 = vmatpush1.bf16.msra.mxu1 %v2360_v47  ;;  %v77_v46 = vld [vmem:[%s3594_s1 + $0x178] sm:$0xff]  ;;  %v2369_v47 = vcombine.high %v85_v36, %v93_v38  ;;  %v44_v58 = vld [vmem:[%s3594_s1 + $0x70] sm:$0xff]  ;;  %v2700_v19 = vld [vmem:[%s3596_s3 + $0x20] sm:$0xff]  }
  0x17   :  { %598 = vmatprep.subr.bf16.mxu0 %v2343_v48  ;;  %641 = vmatprep.subr.bf16.mxu1 %v2345_v49  ;;  %v2366_v48 = vcombine.low %v84_v32, %v92_v33  ;;  %v52_v49 = vld [vmem:[%s3594_s1 + $0xb0] sm:$0xff]  ;;  %v2319_v2 = vcombine.high %v36_v57, %v44_v58  ;;  %v2686_v5 = vld [vmem:[%s3596_s3 + $0x78] sm:$0xff]   ;;  %v2318_v6 = vcombine.low %v36_v57, %v44_v58  ;;  %v2710_v29 = vld [vmem:[%s3596_s3 + $0x48] sm:$0xff]  }
  0x18   :  { %620 = vmatprep.mubr.bf16.mxu0 %v2820_v3  ;;  %663 = vmatprep.mubr.bf16.mxu1 %v2820_v3  ;;  %v2335_v60 = vcombine.high %v52_v49, %v60_v50  ;;  %v2688_v8 = vld [vmem:[%s3596_s3 + $0x38] sm:$0xff]   ;;  %v2691_v11 = vld [vmem:[%s3596_s3 + $0xf0] sm:$0xff]   ;;  %v2711_v30 = vld [vmem:[%s3596_s3 + $0xc8] sm:$0xff]  }
  0x19   :  { %v2693_v13 = vld [vmem:[%s3596_s3 + $0xb0] sm:$0xff]   ;;  %v2702_v21 = vld [vmem:[%s3596_s3 + $0x58] sm:$0xff]   ;;  %v2713_v32 = vld [vmem:[%s3596_s3 + $0x88] sm:$0xff]  }
  0x1a   :  { %599 = vmatpush1.bf16.msra.mxu0 %v2342_v54  ;;  %642 = vmatpush1.bf16.msra.mxu1 %v2344_v55  ;;  %v61_v54 = vld [vmem:[%s3594_s1 + $0xf8] sm:$0xff]  ;;  %v2353_v55 = vcombine.high %v69_v45, %v77_v46  ;;  %v2708_v27 = vld [vmem:[%s3596_s3 + $0x10] sm:$0xff]   ;;  %v2714_v33 = vld [vmem:[%s3596_s3 + $0x40] sm:$0xff]  }
  0x1b   :  { %600 = vmatprep.subr.bf16.mxu0 %v2327_v56  ;;  %643 = vmatprep.subr.bf16.mxu1 %v2329_v59  ;;  %v2350_v56 = vcombine.low %v68_v40, %v76_v41  ;;  %v2352_v59 = vcombine.low %v69_v45, %v77_v46  ;;  %v2337_v63 = vcombine.high %v53_v53, %v61_v54  ;;  %v2703_v22 = vld [vmem:[%s3596_s3 + $0xd8] sm:$0xff]   ;;  %v2717_v36 = vld [vmem:[%s3596_s3 + $0x80] sm:$0xff]  }
  0x1c   :  { %v2705_v24 = vld [vmem:[%s3596_s3 + $0x98] sm:$0xff]   ;;  %v3195_v45 = vld [vmem:[%s3597_s2] sm:$0xff] }
  0x1d   :  { %v2719_v38 = vld [vmem:[%s3596_s3 + $0x1f8] sm:$0xff]  }
  0x1e   :  { %601 = vmatpush1.bf16.msra.mxu0 %v2326_v62  ;;  %644 = vmatpush1.bf16.msra.mxu1 %v2328_v0  ;;  %v45_v62 = vld [vmem:[%s3594_s1 + $0x78] sm:$0xff]  ;;  %v2334_v0 = vcombine.low %v52_v49, %v60_v50 }
  0x1f   :  { %602 = vmatprep.subr.bf16.mxu0 %v2311_v1  ;;  %645 = vmatprep.subr.bf16.mxu1 %v2313_v4  ;;  %v2336_v1 = vcombine.low %v53_v53, %v61_v54  ;;  %v2321_v4 = vcombine.high %v37_v61, %v45_v62 }
  0x22   :  { %603 = vmatpush1.bf16.msra.mxu0 %v2310_v7  ;;  %646 = vmatpush1.bf16.msra.mxu1 %v2312_v9  ;;  %v2687_v7 = vld [vmem:[%s3596_s3 + $0xf8] sm:$0xff]  }
  0x23   :  { %682 = vmatprep.subr.bf16.mxu0 %v2363_v10  ;;  %725 = vmatprep.subr.bf16.mxu1 %v2365_v12  ;;  %v2689_v9 = vld [vmem:[%s3596_s3 + $0xb8] sm:$0xff]   ;;  %v2690_v10 = vld [vmem:[%s3596_s3 + $0x70] sm:$0xff]  }
  0x24   :  { %v2692_v12 = vld [vmem:[%s3596_s3 + $0x30] sm:$0xff]  }
  0x25   :  { %2372 = vmatmul.mubr.msk.bf16.vlgmr.msra.gmra.mxu0 %vm498_vm0, %v2935_v43  ;;  %2373 = vmatmul.mubr.msk.bf16.vlgmr.msra.gmra.mxu1 %vm498_vm0, %v2935_v43 }
  0x26   :  { %683 = vmatpush1.bf16.msra.mxu0 %v2362_v15  ;;  %726 = vmatpush1.bf16.msra.mxu1 %v2364_v17  ;;  %v2695_v15 = vld [vmem:[%s3596_s3 + $0xe8] sm:$0xff]  }
  0x27   :  { %684 = vmatprep.subr.bf16.mxu0 %v2347_v18  ;;  %727 = vmatprep.subr.bf16.mxu1 %v2349_v20  ;;  %v2697_v17 = vld [vmem:[%s3596_s3 + $0xa8] sm:$0xff]   ;;  %v2699_v18 = vld [vmem:[%s3596_s3 + $0xe0] sm:$0xff]  }
  0x28   :  { %706 = vmatprep.mubr.bf16.mxu0 %v2820_v3  ;;  %749 = vmatprep.mubr.bf16.mxu1 %v2820_v3  ;;  %v2701_v20 = vld [vmem:[%s3596_s3 + $0xa0] sm:$0xff]  }
  0x2a   :  { %685 = vmatpush1.bf16.msra.mxu0 %v2346_v23  ;;  %728 = vmatpush1.bf16.msra.mxu1 %v2348_v25  ;;  %v2704_v23 = vld [vmem:[%s3596_s3 + $0x18] sm:$0xff]   ;;  %v2706_v25 = vld [vmem:[%s3596_s3 + $0x50] sm:$0xff]  }
  0x2b   :  { %686 = vmatprep.subr.bf16.mxu0 %v2331_v26  ;;  %729 = vmatprep.subr.bf16.mxu1 %v2333_v28  ;;  %v2707_v26 = vld [vmem:[%s3596_s3 + $0xd0] sm:$0xff]  }
  0x2c   :  { %v2709_v28 = vld [vmem:[%s3596_s3 + $0x90] sm:$0xff]  }
  0x2e   :  { %687 = vmatpush1.bf16.msra.mxu0 %v2330_v31  ;;  %730 = vmatpush1.bf16.msra.mxu1 %v2332_v34  ;;  %v2712_v31 = vld [vmem:[%s3596_s3 + $0x8] sm:$0xff]   ;;  %v2715_v34 = vld [vmem:[%s3596_s3 + $0xc0] sm:$0xff]  }
  0x2f   :  { %688 = vmatprep.subr.bf16.mxu0 %v2315_v35  ;;  %731 = vmatprep.subr.bf16.mxu1 %v2317_v37  ;;  %v2716_v35 = vld [vmem:[%s3596_s3] sm:$0xff]   ;;  %v2718_v37 = vld [vmem:[%s3596_s3 + $0x178] sm:$0xff]  }
  0x32   :  { %689 = vmatpush1.bf16.msra.mxu0 %v2314_v39  ;;  %732 = vmatpush1.bf16.msra.mxu1 %v2316_v42  ;;  %v98_v39 = vlaneseq }
  0x33   :  { %768 = vmatprep.subr.bf16.mxu0 %v2367_v44  ;;  %811 = vmatprep.subr.bf16.mxu1 %v2369_v47 }
  0x34   :  { %v3187_v40 = vshrl.u32 %v98_v39, 7  ;;  %v2732_v39 = vld [vmem:[%s3596_s3 + $0x120] sm:$0xff]  }
  0x35   :  { %2374 = vmatmul.mubr.msk.bf16.vlgmr.msra.gmra.mxu0 %vm498_vm0, %v2935_v43  ;;  %2375 = vmatmul.mubr.msk.bf16.vlgmr.msra.gmra.mxu1 %vm498_vm0, %v2935_v43 }
  0x36   :  { %769 = vmatpush1.bf16.msra.mxu0 %v2366_v48  ;;  %812 = vmatpush1.bf16.msra.mxu1 %v2368_v51  ;;  %v104_v41 = vsub.s32 1, %v3187_v40  ;;  %v100_v42 = vsub.s32 0, %v3187_v40  ;;  %v112_v44 = vsub.s32 3, %v3187_v40  ;;  %v108_v46 = vsub.s32 2, %v3187_v40 }
  0x37   :  { %770 = vmatprep.subr.bf16.mxu0 %v2351_v52  ;;  %813 = vmatprep.subr.bf16.mxu1 %v2353_v55 }
  0x38   :  { %792 = vmatprep.mubr.bf16.mxu0 %v2820_v3  ;;  %835 = vmatprep.mubr.bf16.mxu1 %v2820_v3  ;;  %v2320_v3 = vcombine.low %v37_v61, %v45_v62  ;;  %v105_v49 = vrot.slane %v3195_v45, %v104_v41  ;;  %v101_v50 = vrot.slane %v3195_v45, %v100_v42 }
  0x39   :  { %v113_v52 = vrot.slane %v3195_v45, %v112_v44  ;;  %v109_v53 = vrot.slane %v3195_v45, %v108_v46 }
  0x3a   :  { %771 = vmatpush1.bf16.msra.mxu0 %v2350_v56  ;;  %814 = vmatpush1.bf16.msra.mxu1 %v2352_v59 }
  0x3b   :  { %772 = vmatprep.subr.bf16.mxu0 %v2335_v60  ;;  %815 = vmatprep.subr.bf16.mxu1 %v2337_v63 }
  0x3e   :  { %773 = vmatpush1.bf16.msra.mxu0 %v2334_v0  ;;  %816 = vmatpush1.bf16.msra.mxu1 %v2336_v1 }
  0x3f   :  { %774 = vmatprep.subr.bf16.mxu0 %v2319_v2  ;;  %817 = vmatprep.subr.bf16.mxu1 %v2321_v4 }
  0x42   :  { %775 = vmatpush1.bf16.msra.mxu0 %v2318_v6  ;;  %818 = vmatpush1.bf16.msra.mxu1 %v2320_v3 }
  0x43   :  { %2509 = vmatprep.subr.bf16.mxu0 %v2686_v5  ;;  %2531 = vmatprep.subr.bf16.mxu1 %v2687_v7 }
  0x45   :  { %2376 = vmatmul.mubr.msk.bf16.vlgmr.msra.gmra.mxu0 %vm498_vm0, %v2935_v43  ;;  %2377 = vmatmul.mubr.msk.bf16.vlgmr.msra.gmra.mxu1 %vm498_vm0, %v2935_v43  ;;  %v2698_v43 = vld [vmem:[%s3596_s3 + $0x60] sm:$0xff]  }
  0x46   :  { %2510 = vmatpush3.bf16.msra.mxu0 %v2688_v8  ;;  %2532 = vmatpush3.bf16.msra.mxu1 %v2689_v9 }
  0x47   :  { %2511 = vmatprep.subr.bf16.mxu0 %v2690_v10  ;;  %2533 = vmatprep.subr.bf16.mxu1 %v2691_v11 }
  0x4a   :  { %2512 = vmatpush3.bf16.msra.mxu0 %v2692_v12  ;;  %2534 = vmatpush3.bf16.msra.mxu1 %v2693_v13  ;;  %v2720_v12 = vld [vmem:[%s3596_s3 + $0x138] sm:$0xff]   ;;  %v120_v13 = vsub.s32 5, %v3187_v40 }
  0x4b   :  { %2513 = vmatprep.subr.bf16.mxu0 %v2694_v14  ;;  %2535 = vmatprep.subr.bf16.mxu1 %v2695_v15 }
  0x4e   :  { %2514 = vmatpush3.bf16.msra.mxu0 %v2696_v16  ;;  %2536 = vmatpush3.bf16.msra.mxu1 %v2697_v17  ;;  %v2721_v16 = vld [vmem:[%s3596_s3 + $0x1b8] sm:$0xff]   ;;  %v2722_v17 = vld [vmem:[%s3596_s3 + $0x170] sm:$0xff]  }
  0x4f   :  { %2515 = vmatprep.subr.bf16.mxu0 %v2698_v43  ;;  %2537 = vmatprep.subr.bf16.mxu1 %v2699_v18  ;;  %v128_v43 = vsub.s32 7, %v3187_v40 }
  0x52   :  { %2516 = vmatpush3.bf16.msra.mxu0 %v2700_v19  ;;  %2538 = vmatpush3.bf16.msra.mxu1 %v2701_v20  ;;  %v2723_v19 = vld [vmem:[%s3596_s3 + $0x1f0] sm:$0xff]  }
  0x53   :  { %2517 = vmatprep.subr.bf16.mxu0 %v2702_v21  ;;  %2539 = vmatprep.subr.bf16.mxu1 %v2703_v22  ;;  %v2724_v20 = vld [vmem:[%s3596_s3 + $0x130] sm:$0xff]   ;;  %v121_v21 = vrot.slane %v3195_v45, %v120_v13 }
  0x54   :  { %v2725_v22 = vld [vmem:[%s3596_s3 + $0x1b0] sm:$0xff]  }
  0x56   :  { %2518 = vmatpush3.bf16.msra.mxu0 %v2704_v23  ;;  %2540 = vmatpush3.bf16.msra.mxu1 %v2705_v24  ;;  %v2726_v23 = vld [vmem:[%s3596_s3 + $0x168] sm:$0xff]  }
  0x57   :  { %2519 = vmatprep.subr.bf16.mxu0 %v2706_v25  ;;  %2541 = vmatprep.subr.bf16.mxu1 %v2707_v26  ;;  %v129_v25 = vrot.slane %v3195_v45, %v128_v43  ;;  %v2727_v26 = vld [vmem:[%s3596_s3 + $0x1e8] sm:$0xff]  }
  0x5a   :  { %2520 = vmatpush3.bf16.msra.mxu0 %v2708_v27  ;;  %2542 = vmatpush3.bf16.msra.mxu1 %v2709_v28 }
  0x5b   :  { %2521 = vmatprep.subr.bf16.mxu0 %v2710_v29  ;;  %2543 = vmatprep.subr.bf16.mxu1 %v2711_v30  ;;  %v2728_v29 = vld [vmem:[%s3596_s3 + $0x128] sm:$0xff]  }
  0x5e   :  { %2522 = vmatpush3.bf16.msra.mxu0 %v2712_v31  ;;  %2544 = vmatpush3.bf16.msra.mxu1 %v2713_v32  ;;  %v2729_v32 = vld [vmem:[%s3596_s3 + $0x1a8] sm:$0xff]  }
  0x5f   :  { %2523 = vmatprep.subr.bf16.mxu0 %v2714_v33  ;;  %2545 = vmatprep.subr.bf16.mxu1 %v2715_v34  ;;  %v2730_v33 = vld [vmem:[%s3596_s3 + $0x160] sm:$0xff]  }
  0x62   :  { %2524 = vmatpush3.bf16.msra.mxu0 %v2716_v35  ;;  %2546 = vmatpush3.bf16.msra.mxu1 %v2717_v36  ;;  %v2731_v36 = vld [vmem:[%s3596_s3 + $0x1e0] sm:$0xff]  }
  0x63   :  { %2553 = vmatprep.subr.bf16.mxu0 %v2718_v37  ;;  %2575 = vmatprep.subr.bf16.mxu1 %v2719_v38 }
  0xd5   :  { %v536_v47 = vpop.f32.mrf.mxu0  ;;  %v579_v48 = vpop.f32.mrf.mxu1 }
  0xd6   :  { %v537_v59 = vadd.f32 %v536_v47, %v101_v50  ;;  %v580_v63 = vadd.f32 %v579_v48, %v109_v53 }
  0xd7   :  { %v538_v51 = vpop.f32.mrf.mxu0  ;;  %v581_v54 = vpop.f32.mrf.mxu1 }
  0xd8   :  { %v539_v56 = vadd.f32 %v538_v51, %v105_v49  ;;  %v582_v60 = vadd.f32 %v581_v54, %v113_v52  ;;  %v846_v3 = vmax.f32 %v537_v59, 0.0  ;;  %v848_v10 = vmax.f32 %v580_v63, 0.0  ;;  %v2734_v51 = vld [vmem:[%s3596_s3 + $0x158] sm:$0xff]  }
  0xd9   :  { %v540_v55 = vpop.f32.mrf.mxu0  ;;  %v583_v58 = vpop.f32.mrf.mxu1  ;;  %v2735_v54 = vld [vmem:[%s3596_s3 + $0x1d8] sm:$0xff]   ;;  %v116_v59 = vsub.s32 4, %v3187_v40  ;;  %v124_v63 = vsub.s32 6, %v3187_v40  ;;  %v2809_v40 = vld [vmem:[%s3596_s3 + $0x388] sm:$0xff]  }
  0xda   :  { %v541_v57 = vadd.f32 %v540_v55, %v101_v50  ;;  %v584_v61 = vadd.f32 %v583_v58, %v109_v53  ;;  %v847_v5 = vmax.f32 %v539_v56, 0.0  ;;  %v849_v8 = vmax.f32 %v582_v60, 0.0  ;;  %v2733_v50 = vld [vmem:[%s3596_s3 + $0x1a0] sm:$0xff]   ;;  %v2737_v60 = vld [vmem:[%s3596_s3 + $0x198] sm:$0xff]  }
  0xdb   :  { %v542_v62 = vpop.f32.mrf.mxu0  ;;  %v585_v1 = vpop.f32.mrf.mxu1 }
  0xdc   :  { %v543_v0 = vadd.f32 %v542_v62, %v105_v49  ;;  %v862_v2 = vmax.f32 %v541_v57, 0.0  ;;  %v586_v4 = vadd.f32 %v585_v1, %v113_v52  ;;  %v864_v6 = vmax.f32 %v584_v61, 0.0  ;;  %v2736_v57 = vld [vmem:[%s3596_s3 + $0x118] sm:$0xff]   ;;  %v2738_v61 = vld [vmem:[%s3596_s3 + $0x150] sm:$0xff]   ;;  %v3287_v1 = vld [vmem:[%s3597_s2 + $0x8] sm:$0xff] }
  0xde   :  { %v863_v7 = vmax.f32 %v543_v0, 0.0  ;;  %v865_v9 = vmax.f32 %v586_v4, 0.0  ;;  %v878_v14 = vpack.c.bf16 %v862_v2, %v846_v3  ;;  %v880_v18 = vpack.c.bf16 %v864_v6, %v848_v10  ;;  %v2739_v0 = vld [vmem:[%s3596_s3 + $0x1d0] sm:$0xff]   ;;  %v2742_v6 = vld [vmem:[%s3596_s3 + $0x148] sm:$0xff]  }
  0xdf   :  { %v2740_v2 = vld [vmem:[%s3596_s3 + $0x110] sm:$0xff]   ;;  %v117_v4 = vrot.slane %v3195_v45, %v116_v59  ;;  %v125_v3 = vrot.slane %v3195_v45, %v124_v63  ;;  %v2744_v45 = vld [vmem:[%s3596_s3 + $0x108] sm:$0xff]  }
  0xe0   :  { %v879_v11 = vpack.c.bf16 %v863_v7, %v847_v5  ;;  %v881_v15 = vpack.c.bf16 %v865_v9, %v849_v8  ;;  %v2741_v5 = vld [vmem:[%s3596_s3 + $0x190] sm:$0xff]   ;;  %v2743_v8 = vld [vmem:[%s3596_s3 + $0x1c8] sm:$0xff]   ;;  %v137_v9 = vrot.slane %v3287_v1, %v104_v41 }
  0xe1   :  { %v2745_v41 = vld [vmem:[%s3596_s3 + $0x188] sm:$0xff]  }
  0xe2   :  { %1957 = vmatprep.mubr.bf16.mxu0 %v879_v11  ;;  %1998 = vmatprep.mubr.bf16.mxu1 %v881_v15 }
  0xe3   :  { %1958 = vmatmul.mubr.bf16.vlgmr.msra.gmra.mxu0 %v878_v14  ;;  %1999 = vmatmul.mubr.bf16.vlgmr.msra.gmra.mxu1 %v880_v18 }
  0xe4   :  { %2554 = vmatpush3.bf16.msra.mxu0 %v2720_v12  ;;  %2576 = vmatpush3.bf16.msra.mxu1 %v2721_v16  ;;  %v145_v12 = vrot.slane %v3287_v1, %v112_v44 }
  0xe5   :  { %2555 = vmatprep.subr.bf16.mxu0 %v2722_v17  ;;  %v3236_v24 = vpop.f32.mrf.mxu0  ;;  %2577 = vmatprep.subr.bf16.mxu1 %v2723_v19  ;;  %v3244_v27 = vpop.f32.mrf.mxu1  ;;  %v2746_v17 = vld [vmem:[%s3596_s3 + $0x140] sm:$0xff]  }
  0xe6   :  { %v623_v15 = vadd.f32 %v3236_v24, %v117_v4  ;;  %v666_v18 = vadd.f32 %v3244_v27, %v125_v3 }
  0xe7   :  { %v624_v28 = vpop.f32.mrf.mxu0  ;;  %v667_v31 = vpop.f32.mrf.mxu1 }
  0xe8   :  { %2556 = vmatpush3.bf16.msra.mxu0 %v2724_v20  ;;  %v625_v30 = vadd.f32 %v624_v28, %v121_v21  ;;  %2578 = vmatpush3.bf16.msra.mxu1 %v2725_v22  ;;  %v668_v35 = vadd.f32 %v667_v31, %v129_v25  ;;  %v2747_v20 = vld [vmem:[%s3596_s3 + $0x1c0] sm:$0xff]   ;;  %v2750_v31 = vld [vmem:[%s3596_s3 + $0x278] sm:$0xff]  }
  0xe9   :  { %2557 = vmatprep.subr.bf16.mxu0 %v2726_v23  ;;  %v626_v34 = vpop.f32.mrf.mxu0  ;;  %2579 = vmatprep.subr.bf16.mxu1 %v2727_v26  ;;  %v669_v37 = vpop.f32.mrf.mxu1 }
  0xea   :  { %v851_v47 = vmax.f32 %v625_v30, 0.0  ;;  %v853_v52 = vmax.f32 %v668_v35, 0.0  ;;  %v627_v16 = vadd.f32 %v626_v34, %v117_v4  ;;  %v670_v19 = vadd.f32 %v669_v37, %v125_v3  ;;  %v2749_v30 = vld [vmem:[%s3596_s3 + $0x180] sm:$0xff]   ;;  %v2751_v35 = vld [vmem:[%s3596_s3 + $0x2f8] sm:$0xff]  }
  0xeb   :  { %v628_v38 = vpop.f32.mrf.mxu0  ;;  %v671_v49 = vpop.f32.mrf.mxu1  ;;  %v2764_v4 = vld [vmem:[%s3596_s3 + $0x220] sm:$0xff]   ;;  %v2766_v3 = vld [vmem:[%s3596_s3 + $0x258] sm:$0xff]  }
  0xec   :  { %2558 = vmatpush3.bf16.msra.mxu0 %v2728_v29  ;;  %v629_v48 = vadd.f32 %v628_v38, %v121_v21  ;;  %2580 = vmatpush3.bf16.msra.mxu1 %v2729_v32  ;;  %v672_v53 = vadd.f32 %v671_v49, %v129_v25  ;;  %v2748_v25 = vld [vmem:[%s3596_s3 + $0x100] sm:$0xff]   ;;  %v850_v29 = vmax.f32 %v623_v15, 0.0  ;;  %v866_v27 = vmax.f32 %v627_v16, 0.0  ;;  %v2753_v49 = vld [vmem:[%s3596_s3 + $0x2b8] sm:$0xff]   ;;  %v2771_v15 = vld [vmem:[%s3596_s3 + $0x2d0] sm:$0xff]  }
  0xed   :  { %2559 = vmatprep.subr.bf16.mxu0 %v2730_v33  ;;  %2581 = vmatprep.subr.bf16.mxu1 %v2731_v36  ;;  %v852_v33 = vmax.f32 %v666_v18, 0.0  ;;  %v868_v34 = vmax.f32 %v670_v19, 0.0  ;;  %v133_v18 = vrot.slane %v3287_v1, %v100_v42  ;;  %v2773_v19 = vld [vmem:[%s3596_s3 + $0x290] sm:$0xff]   ;;  %v153_v42 = vrot.slane %v3287_v1, %v120_v13  ;;  %v2777_v13 = vld [vmem:[%s3596_s3 + $0x288] sm:$0xff]  }
  0xee   :  { %v867_v55 = vmax.f32 %v629_v48, 0.0  ;;  %v869_v56 = vmax.f32 %v672_v53, 0.0  ;;  %v882_v48 = vpack.c.bf16 %v866_v27, %v850_v29 }
  0xf0   :  { %2560 = vmatpush3.bf16.msra.mxu0 %v2732_v39  ;;  %v883_v58 = vpack.c.bf16 %v867_v55, %v851_v47  ;;  %2582 = vmatpush3.bf16.msra.mxu1 %v2733_v50  ;;  %v885_v62 = vpack.c.bf16 %v869_v56, %v853_v52  ;;  %v2752_v47 = vld [vmem:[%s3596_s3 + $0x238] sm:$0xff]   ;;  %v2754_v50 = vld [vmem:[%s3596_s3 + $0x270] sm:$0xff]  }
  0xf1   :  { %2561 = vmatprep.subr.bf16.mxu0 %v2734_v51  ;;  %2583 = vmatprep.subr.bf16.mxu1 %v2735_v54  ;;  %v884_v51 = vpack.c.bf16 %v868_v34, %v852_v33  ;;  %v2755_v52 = vld [vmem:[%s3596_s3 + $0x2f0] sm:$0xff]   ;;  %v2780_v34 = vld [vmem:[%s3596_s3 + $0x200] sm:$0xff]  }
  0xf2   :  { %2039 = vmatprep.mubr.bf16.mxu0 %v883_v58  ;;  %2080 = vmatprep.mubr.bf16.mxu1 %v885_v62  ;;  %v2756_v55 = vld [vmem:[%s3596_s3 + $0x230] sm:$0xff]   ;;  %v2759_v58 = vld [vmem:[%s3596_s3 + $0x2e8] sm:$0xff]   ;;  %v2762_v62 = vld [vmem:[%s3596_s3 + $0x260] sm:$0xff]  }
  0xf3   :  { %v2757_v56 = vld [vmem:[%s3596_s3 + $0x2b0] sm:$0xff]  }
  0xf4   :  { %2562 = vmatpush3.bf16.msra.mxu0 %v2736_v57  ;;  %2584 = vmatpush3.bf16.msra.mxu1 %v2737_v60  ;;  %v2758_v57 = vld [vmem:[%s3596_s3 + $0x268] sm:$0xff]  }
  0xf5   :  { %2563 = vmatprep.subr.bf16.mxu0 %v2738_v61  ;;  %v3301_v7 = vpop.f32.mrf.mxu0  ;;  %2585 = vmatprep.subr.bf16.mxu1 %v2739_v0  ;;  %v3312_v10 = vpop.f32.mrf.mxu1  ;;  %v2760_v60 = vld [vmem:[%s3596_s3 + $0x228] sm:$0xff]   ;;  %v2763_v0 = vld [vmem:[%s3596_s3 + $0x2e0] sm:$0xff]  }
  0xf6   :  { %v2761_v61 = vld [vmem:[%s3596_s3 + $0x2a8] sm:$0xff]  }
  0xf7   :  { %v710_v11 = vpop.f32.mrf.mxu0  ;;  %v753_v14 = vpop.f32.mrf.mxu1 }
  0xf8   :  { %2564 = vmatpush3.bf16.msra.mxu0 %v2740_v2  ;;  %2586 = vmatpush3.bf16.msra.mxu1 %v2741_v5  ;;  %v711_v21 = vadd.f32 %v710_v11, %v137_v9  ;;  %v754_v23 = vadd.f32 %v753_v14, %v145_v12  ;;  %v2768_v11 = vld [vmem:[%s3596_s3 + $0x218] sm:$0xff]   ;;  %v2770_v14 = vld [vmem:[%s3596_s3 + $0x250] sm:$0xff]  }
  0xf9   :  { %2565 = vmatprep.subr.bf16.mxu0 %v2742_v6  ;;  %v3327_v44 = vpop.f32.mrf.mxu0  ;;  %2587 = vmatprep.subr.bf16.mxu1 %v2743_v8  ;;  %v3333_v22 = vpop.f32.mrf.mxu1  ;;  %v2765_v6 = vld [vmem:[%s3596_s3 + $0x2a0] sm:$0xff]   ;;  %v2767_v8 = vld [vmem:[%s3596_s3 + $0x2d8] sm:$0xff]  }
  0xfa   :  { %v855_v36 = vmax.f32 %v711_v21, 0.0  ;;  %v857_v38 = vmax.f32 %v754_v23, 0.0  ;;  %v141_v21 = vrot.slane %v3287_v1, %v108_v46  ;;  %v2775_v23 = vld [vmem:[%s3596_s3 + $0x2c8] sm:$0xff]   ;;  %v713_v29 = vadd.f32 %v3327_v44, %v133_v18 }
  0xfb   :  { %v714_v24 = vpop.f32.mrf.mxu0  ;;  %v757_v28 = vpop.f32.mrf.mxu1 }
  0xfc   :  { %2566 = vmatpush3.bf16.msra.mxu0 %v2744_v45  ;;  %v715_v26 = vadd.f32 %v714_v24, %v137_v9  ;;  %2588 = vmatpush3.bf16.msra.mxu1 %v2745_v41  ;;  %v758_v32 = vadd.f32 %v757_v28, %v145_v12  ;;  %v2769_v45 = vld [vmem:[%s3596_s3 + $0x298] sm:$0xff]   ;;  %v2772_v41 = vld [vmem:[%s3596_s3 + $0x210] sm:$0xff]   ;;  %v161_v24 = vrot.slane %v3287_v1, %v128_v43  ;;  %v2778_v43 = vld [vmem:[%s3596_s3 + $0x240] sm:$0xff]  }
  0xfd   :  { %2567 = vmatprep.subr.bf16.mxu0 %v2746_v17  ;;  %2589 = vmatprep.subr.bf16.mxu1 %v2747_v20  ;;  %v2774_v20 = vld [vmem:[%s3596_s3 + $0x248] sm:$0xff]   ;;  %v709_v28 = vadd.f32 %v3301_v7, %v133_v18  ;;  %v752_v27 = vadd.f32 %v3312_v10, %v141_v21  ;;  %v2779_v7 = vld [vmem:[%s3596_s3 + $0x2c0] sm:$0xff]   ;;  %v2803_v18 = vld [vmem:[%s3596_s3 + $0x3d0] sm:$0xff]  }
  0xfe   :  { %v871_v37 = vmax.f32 %v715_v26, 0.0  ;;  %v873_v39 = vmax.f32 %v758_v32, 0.0  ;;  %v2776_v26 = vld [vmem:[%s3596_s3 + $0x208] sm:$0xff]   ;;  %v2781_v10 = vld [vmem:[%s3596_s3 + $0x280] sm:$0xff]  }
 0x100   :  { %2568 = vmatpush3.bf16.msra.mxu0 %v2748_v25  ;;  %2590 = vmatpush3.bf16.msra.mxu1 %v2749_v30  ;;  %v887_v53 = vpack.c.bf16 %v871_v37, %v855_v36  ;;  %v889_v54 = vpack.c.bf16 %v873_v39, %v857_v38  ;;  %v756_v30 = vadd.f32 %v3333_v22, %v141_v21  ;;  %v870_v36 = vmax.f32 %v713_v29, 0.0  ;;  %v2782_v22 = vld [vmem:[%s3596_s3 + $0x378] sm:$0xff]   ;;  %v2805_v21 = vld [vmem:[%s3596_s3 + $0x390] sm:$0xff]  }
 0x101   :  { %2597 = vmatprep.subr.bf16.mxu0 %v2750_v31  ;;  %2619 = vmatprep.subr.bf16.mxu1 %v2751_v35  ;;  %v854_v35 = vmax.f32 %v709_v28, 0.0  ;;  %v856_v37 = vmax.f32 %v752_v27, 0.0  ;;  %v2783_v39 = vld [vmem:[%s3596_s3 + $0x3f8] sm:$0xff]  }
 0x102   :  { %v872_v38 = vmax.f32 %v756_v30, 0.0 }
 0x103   :  { %2040 = vmatmul.mubr.bf16.vlgmr.msra.gmra.mxu0 %v882_v48  ;;  %2081 = vmatmul.mubr.bf16.vlgmr.msra.gmra.mxu1 %v884_v51  ;;  %v2784_v51 = vld [vmem:[%s3596_s3 + $0x338] sm:$0xff]  }
 0x104   :  { %2598 = vmatpush3.bf16.msra.mxu0 %v2752_v47  ;;  %2620 = vmatpush3.bf16.msra.mxu1 %v2753_v49 }
 0x105   :  { %2599 = vmatprep.subr.bf16.mxu0 %v2754_v50  ;;  %2621 = vmatprep.subr.bf16.mxu1 %v2755_v52  ;;  %v3383_v2 = vpop.f32.mrf.mxu0  ;;  %v3388_v5 = vpop.f32.mrf.mxu1  ;;  %v886_v52 = vpack.c.bf16 %v870_v36, %v854_v35 }
 0x106   :  { %2121 = vmatprep.mubr.bf16.mxu0 %v887_v53  ;;  %2162 = vmatprep.mubr.bf16.mxu1 %v889_v54  ;;  %v2785_v53 = vld [vmem:[%s3596_s3 + $0x3b8] sm:$0xff]   ;;  %v2786_v54 = vld [vmem:[%s3596_s3 + $0x370] sm:$0xff]  }
 0x107   :  { %v796_v9 = vpop.f32.mrf.mxu0  ;;  %v839_v12 = vpop.f32.mrf.mxu1 }
 0x108   :  { %2600 = vmatpush3.bf16.msra.mxu0 %v2756_v55  ;;  %2622 = vmatpush3.bf16.msra.mxu1 %v2757_v56  ;;  %v797_v44 = vadd.f32 %v796_v9, %v153_v42  ;;  %v840_v32 = vadd.f32 %v839_v12, %v161_v24  ;;  %v888_v55 = vpack.c.bf16 %v872_v38, %v856_v37  ;;  %v2787_v56 = vld [vmem:[%s3596_s3 + $0x3f0] sm:$0xff]   ;;  %v2796_v9 = vld [vmem:[%s3596_s3 + $0x320] sm:$0xff]   ;;  %v2798_v12 = vld [vmem:[%s3596_s3 + $0x358] sm:$0xff]  }
 0x109   :  { %2601 = vmatprep.subr.bf16.mxu0 %v2758_v57  ;;  %2623 = vmatprep.subr.bf16.mxu1 %v2759_v58  ;;  %v3411_v16 = vpop.f32.mrf.mxu0  ;;  %v3416_v17 = vpop.f32.mrf.mxu1 }
 0x10a   :  { %v859_v47 = vmax.f32 %v797_v44, 0.0  ;;  %v861_v49 = vmax.f32 %v840_v32, 0.0 }
 0x10b   :  { %v800_v25 = vpop.f32.mrf.mxu0  ;;  %v843_v46 = vpop.f32.mrf.mxu1 }
 0x10c   :  { %2602 = vmatpush3.bf16.msra.mxu0 %v2760_v60  ;;  %2624 = vmatpush3.bf16.msra.mxu1 %v2761_v61  ;;  %v801_v31 = vadd.f32 %v800_v25, %v153_v42  ;;  %v844_v33 = vadd.f32 %v843_v46, %v161_v24  ;;  %v2788_v60 = vld [vmem:[%s3596_s3 + $0x330] sm:$0xff]   ;;  %v157_v42 = vrot.slane %v3287_v1, %v124_v63  ;;  %v2807_v24 = vld [vmem:[%s3596_s3 + $0x3c8] sm:$0xff]   ;;  %v2810_v63 = vld [vmem:[%s3596_s3 + $0x340] sm:$0xff]  }
 0x10d   :  { %2603 = vmatprep.subr.bf16.mxu0 %v2762_v62  ;;  %2625 = vmatprep.subr.bf16.mxu1 %v2763_v0  ;;  %v2789_v61 = vld [vmem:[%s3596_s3 + $0x3b0] sm:$0xff]   ;;  %v2790_v62 = vld [vmem:[%s3596_s3 + $0x368] sm:$0xff]  }
 0x10e   :  { %v875_v48 = vmax.f32 %v801_v31, 0.0  ;;  %v877_v50 = vmax.f32 %v844_v33, 0.0  ;;  %v2791_v0 = vld [vmem:[%s3596_s3 + $0x3e8] sm:$0xff]   ;;  %v842_v46 = vadd.f32 %v3416_v17, %v157_v42 }
 0x110   :  { %2604 = vmatpush3.bf16.msra.mxu0 %v2764_v4  ;;  %2626 = vmatpush3.bf16.msra.mxu1 %v2765_v6  ;;  %v891_v57 = vpack.c.bf16 %v875_v48, %v859_v47  ;;  %v893_v58 = vpack.c.bf16 %v877_v50, %v861_v49  ;;  %v2792_v4 = vld [vmem:[%s3596_s3 + $0x328] sm:$0xff]   ;;  %v876_v17 = vmax.f32 %v842_v46, 0.0  ;;  %v2378_v49 = vld [vmem:[%s3598_s4] ss:$0 sm:$0xff] }
 0x111   :  { %2605 = vmatprep.subr.bf16.mxu0 %v2766_v3  ;;  %2627 = vmatprep.subr.bf16.mxu1 %v2767_v8  ;;  %v2793_v6 = vld [vmem:[%s3596_s3 + $0x3a8] sm:$0xff]   ;;  %v2794_v3 = vld [vmem:[%s3596_s3 + $0x360] sm:$0xff]  }
 0x112   :  { %v2795_v8 = vld [vmem:[%s3596_s3 + $0x3e0] sm:$0xff]  }
 0x114   :  { %2606 = vmatpush3.bf16.msra.mxu0 %v2768_v11  ;;  %2628 = vmatpush3.bf16.msra.mxu1 %v2769_v45  ;;  %v2797_v11 = vld [vmem:[%s3596_s3 + $0x3a0] sm:$0xff]   ;;  %v2799_v45 = vld [vmem:[%s3596_s3 + $0x3d8] sm:$0xff]  }
 0x115   :  { %2607 = vmatprep.subr.bf16.mxu0 %v2770_v14  ;;  %2629 = vmatprep.subr.bf16.mxu1 %v2771_v15  ;;  %v2800_v14 = vld [vmem:[%s3596_s3 + $0x318] sm:$0xff]  }
 0x116   :  { %v2801_v15 = vld [vmem:[%s3596_s3 + $0x398] sm:$0xff]  }
 0x118   :  { %2608 = vmatpush3.bf16.msra.mxu0 %v2772_v41  ;;  %2630 = vmatpush3.bf16.msra.mxu1 %v2773_v19  ;;  %v2802_v41 = vld [vmem:[%s3596_s3 + $0x350] sm:$0xff]  }
 0x119   :  { %2609 = vmatprep.subr.bf16.mxu0 %v2774_v20  ;;  %2631 = vmatprep.subr.bf16.mxu1 %v2775_v23  ;;  %v2804_v19 = vld [vmem:[%s3596_s3 + $0x310] sm:$0xff]   ;;  %v149_v20 = vrot.slane %v3287_v1, %v116_v59  ;;  %v2806_v23 = vld [vmem:[%s3596_s3 + $0x348] sm:$0xff]   ;;  %v838_v1 = vadd.f32 %v3388_v5, %v157_v42  ;;  %v2813_v5 = vld [vmem:[%s3596_s3 + $0x380] sm:$0xff]  }
 0x11a   :  { %v2808_v59 = vld [vmem:[%s3596_s3 + $0x308] sm:$0xff]  }
 0x11b   :  { %v795_v25 = vadd.f32 %v3383_v2, %v149_v20  ;;  %v2811_v2 = vld [vmem:[%s3596_s3 + $0x3c0] sm:$0xff]  }
 0x11c   :  { %2610 = vmatpush3.bf16.msra.mxu0 %v2776_v26  ;;  %2632 = vmatpush3.bf16.msra.mxu1 %v2777_v13  ;;  %v799_v26 = vadd.f32 %v3411_v16, %v149_v20  ;;  %v2812_v16 = vld [vmem:[%s3596_s3 + $0x300] sm:$0xff]   ;;  %v860_v13 = vmax.f32 %v838_v1, 0.0 }
 0x11d   :  { %2611 = vmatprep.subr.bf16.mxu0 %v2778_v43  ;;  %2633 = vmatprep.subr.bf16.mxu1 %v2779_v7  ;;  %v858_v28 = vmax.f32 %v795_v25, 0.0 }
 0x11e   :  { %v874_v29 = vmax.f32 %v799_v26, 0.0  ;;  %v892_v27 = vpack.c.bf16 %v876_v17, %v860_v13 }
 0x120   :  { %2612 = vmatpush3.bf16.msra.mxu0 %v2780_v34  ;;  %2634 = vmatpush3.bf16.msra.mxu1 %v2781_v10  ;;  %v890_v43 = vpack.c.bf16 %v874_v29, %v858_v28 }
 0x121   :  { %2641 = vmatprep.subr.bf16.mxu0 %v2782_v22  ;;  %2663 = vmatprep.subr.bf16.mxu1 %v2783_v39 }
 0x123   :  { %2122 = vmatmul.mubr.bf16.vlgmr.msra.gmra.mxu0 %v886_v52  ;;  %2163 = vmatmul.mubr.bf16.vlgmr.msra.gmra.mxu1 %v888_v55 }
 0x124   :  { %2642 = vmatpush3.bf16.msra.mxu0 %v2784_v51  ;;  %2664 = vmatpush3.bf16.msra.mxu1 %v2785_v53 }
 0x125   :  { %2643 = vmatprep.subr.bf16.mxu0 %v2786_v54  ;;  %2665 = vmatprep.subr.bf16.mxu1 %v2787_v56 }
 0x126   :  { %2203 = vmatprep.mubr.bf16.mxu0 %v891_v57  ;;  %2244 = vmatprep.mubr.bf16.mxu1 %v893_v58 }
 0x128   :  { %2644 = vmatpush3.bf16.msra.mxu0 %v2788_v60  ;;  %2666 = vmatpush3.bf16.msra.mxu1 %v2789_v61 }
 0x129   :  { %2645 = vmatprep.subr.bf16.mxu0 %v2790_v62  ;;  %2667 = vmatprep.subr.bf16.mxu1 %v2791_v0 }
 0x12c   :  { %2646 = vmatpush3.bf16.msra.mxu0 %v2792_v4  ;;  %2668 = vmatpush3.bf16.msra.mxu1 %v2793_v6 }
 0x12d   :  { %2647 = vmatprep.subr.bf16.mxu0 %v2794_v3  ;;  %2669 = vmatprep.subr.bf16.mxu1 %v2795_v8 }
 0x130   :  { %2648 = vmatpush3.bf16.msra.mxu0 %v2796_v9  ;;  %2670 = vmatpush3.bf16.msra.mxu1 %v2797_v11 }
 0x131   :  { %2649 = vmatprep.subr.bf16.mxu0 %v2798_v12  ;;  %2671 = vmatprep.subr.bf16.mxu1 %v2799_v45 }
 0x134   :  { %2650 = vmatpush3.bf16.msra.mxu0 %v2800_v14  ;;  %2672 = vmatpush3.bf16.msra.mxu1 %v2801_v15 }
 0x135   :  { %2651 = vmatprep.subr.bf16.mxu0 %v2802_v41  ;;  %2673 = vmatprep.subr.bf16.mxu1 %v2803_v18 }
 0x138   :  { %2652 = vmatpush3.bf16.msra.mxu0 %v2804_v19  ;;  %2674 = vmatpush3.bf16.msra.mxu1 %v2805_v21 }
 0x139   :  { %2653 = vmatprep.subr.bf16.mxu0 %v2806_v23  ;;  %2675 = vmatprep.subr.bf16.mxu1 %v2807_v24 }
 0x13c   :  { %2654 = vmatpush3.bf16.msra.mxu0 %v2808_v59  ;;  %2676 = vmatpush3.bf16.msra.mxu1 %v2809_v40 }
 0x13d   :  { %2655 = vmatprep.subr.bf16.mxu0 %v2810_v63  ;;  %2677 = vmatprep.subr.bf16.mxu1 %v2811_v2 }
 0x140   :  { %2656 = vmatpush3.bf16.msra.mxu0 %v2812_v16  ;;  %2678 = vmatpush3.bf16.msra.mxu1 %v2813_v5 }
 0x143   :  { %2204 = vmatmul.mubr.bf16.vlgmr.msra.gmra.mxu0 %v890_v43  ;;  %2245 = vmatmul.mubr.bf16.vlgmr.msra.gmra.mxu1 %v892_v27 }
 0x1a3   :  { %v2525_v30 = vpop.f32.mrf.mxu0  ;;  %v2547_v7 = vpop.f32.mrf.mxu1 }
 0x1a5   :  { %v2526_v44 = vpop.f32.mrf.mxu0  ;;  %v2548_v31 = vpop.f32.mrf.mxu1 }
 0x1a6   :  { %v2527_v48 = vadd.f32 %v2526_v44, %v2525_v30  ;;  %v2549_v56 = vadd.f32 %v2548_v31, %v2547_v7  ;;  %v2818_v30 = vld [vmem:[%s3595_s0] sm:$0xff] }
 0x1a7   :  { %v2528_v32 = vpop.f32.mrf.mxu0  ;;  %v2550_v33 = vpop.f32.mrf.mxu1 }
 0x1a8   :  { %v1960_v52 = vadd.f32 %v2527_v48, %v2378_v49 }
 0x1a9   :  { %v2529_v34 = vpop.f32.mrf.mxu0  ;;  %v2551_v36 = vpop.f32.mrf.mxu1 }
 0x1aa   :  { %v2530_v53 = vadd.f32 %v2529_v34, %v2528_v32  ;;  %v2001_v58 = vadd.f32 %v2549_v56, %v1960_v52  ;;  %v2552_v0 = vadd.f32 %v2551_v36, %v2550_v33  ;;  %v2819_v32 = vld [vmem:[%s3595_s0 + $0x8] sm:$0xff] }
 0x1ac   :  { %v1963_v60 = vadd.f32 %v2530_v53, %v2378_v49 }
 0x1ae   :  { %v2004_v3 = vadd.f32 %v2552_v0, %v1963_v60  ;;  %v2508_v60 = vld [vmem:[%s3600_s6] ss:$0 sm:$0xff] }
 0x1c3   :  { %v2569_v35 = vpop.f32.mrf.mxu0  ;;  %v2591_v10 = vpop.f32.mrf.mxu1 }
 0x1c5   :  { %v2570_v22 = vpop.f32.mrf.mxu0  ;;  %v2592_v37 = vpop.f32.mrf.mxu1 }
 0x1c6   :  { %v2571_v57 = vadd.f32 %v2570_v22, %v2569_v35  ;;  %v2593_v8 = vadd.f32 %v2592_v37, %v2591_v10 }
 0x1c7   :  { %v2572_v38 = vpop.f32.mrf.mxu0  ;;  %v2594_v39 = vpop.f32.mrf.mxu1 }
 0x1c8   :  { %v2042_v4 = vadd.f32 %v2571_v57, %v2001_v58  ;;  %v2507_v57 = vld [vmem:[%s3599_s5] ss:$0 sm:$0xff] }
 0x1c9   :  { %v2573_v47 = vpop.f32.mrf.mxu0  ;;  %v2595_v51 = vpop.f32.mrf.mxu1 }
 0x1ca   :  { %v2574_v6 = vadd.f32 %v2573_v47, %v2572_v38  ;;  %v2083_v45 = vadd.f32 %v2593_v8, %v2042_v4  ;;  %v2596_v15 = vadd.f32 %v2595_v51, %v2594_v39 }
 0x1cc   :  { %v2045_v14 = vadd.f32 %v2574_v6, %v2004_v3 }
 0x1ce   :  { %v2086_v21 = vadd.f32 %v2596_v15, %v2045_v14 }
 0x1e3   :  { %v2613_v50 = vpop.f32.mrf.mxu0  ;;  %v2635_v54 = vpop.f32.mrf.mxu1 }
 0x1e5   :  { %v2614_v55 = vpop.f32.mrf.mxu0  ;;  %v2636_v61 = vpop.f32.mrf.mxu1 }
 0x1e6   :  { %v2615_v9 = vadd.f32 %v2614_v55, %v2613_v50  ;;  %v2637_v23 = vadd.f32 %v2636_v61, %v2635_v54 }
 0x1e7   :  { %v2616_v62 = vpop.f32.mrf.mxu0  ;;  %v2638_v11 = vpop.f32.mrf.mxu1 }
 0x1e8   :  { %v2124_v41 = vadd.f32 %v2615_v9, %v2083_v45 }
 0x1e9   :  { %v2617_v12 = vpop.f32.mrf.mxu0  ;;  %v2639_v19 = vpop.f32.mrf.mxu1 }
 0x1ea   :  { %v2618_v18 = vadd.f32 %v2617_v12, %v2616_v62  ;;  %v2165_v59 = vadd.f32 %v2637_v23, %v2124_v41  ;;  %v2640_v1 = vadd.f32 %v2639_v19, %v2638_v11 }
 0x1ec   :  { %v2127_v25 = vadd.f32 %v2618_v18, %v2086_v21 }
 0x1ee   :  { %v2168_v29 = vadd.f32 %v2640_v1, %v2127_v25 }
 0x203   :  { %v2657_v20 = vpop.f32.mrf.mxu0  ;;  %v2679_v42 = vpop.f32.mrf.mxu1 }
 0x205   :  { %v2658_v24 = vpop.f32.mrf.mxu0  ;;  %v2680_v40 = vpop.f32.mrf.mxu1 }
 0x206   :  { %v2659_v26 = vadd.f32 %v2658_v24, %v2657_v20  ;;  %v2681_v2 = vadd.f32 %v2680_v40, %v2679_v42 }
 0x207   :  { %v2660_v63 = vpop.f32.mrf.mxu0  ;;  %v2682_v16 = vpop.f32.mrf.mxu1 }
 0x208   :  { %v2206_v46 = vadd.f32 %v2659_v26, %v2165_v59 }
 0x209   :  { %v2661_v28 = vpop.f32.mrf.mxu0  ;;  %v2683_v17 = vpop.f32.mrf.mxu1 }
 0x20a   :  { %v2247_v5 = vadd.f32 %v2681_v2, %v2206_v46  ;;  %v2662_v13 = vadd.f32 %v2661_v28, %v2660_v63  ;;  %v2684_v27 = vadd.f32 %v2683_v17, %v2682_v16 }
 0x20c   :  { %v2209_v43 = vadd.f32 %v2662_v13, %v2168_v29  ;;  %v2253_v7 = vadd.f32 %v2818_v30, %v2247_v5 }
 0x20e   :  { %v2250_v44 = vadd.f32 %v2684_v27, %v2209_v43  ;;  %v2257_v31 = vsel %vm498_vm0, %v2253_v7, 0.0 }
 0x20f   :  { %2258 = vadd.xlane.f32.xlu0 %v2257_v31 }
 0x210   :  { %v2254_v33 = vadd.f32 %v2819_v32, %v2250_v44 }
 0x212   :  { %v2260_v34 = vsel %vm498_vm0, %v2254_v33, 0.0 }
 0x213   :  { %2261 = vadd.xlane.f32.xlu0 %v2260_v34 }
 0x298   :  { %v2259_v35 = vpop.xlane.xlu0 %2258 }
 0x299   :  { %v2264_v36 = vmul.f32 0.015625, %v2259_v35 }
 0x29b   :  { %v2266_v10 = vsub.f32 %v2253_v7, %v2264_v36 }
 0x29c   :  { %v2262_v22 = vpop.xlane.xlu0 %2261 }
 0x29d   :  { %v2265_v37 = vmul.f32 0.015625, %v2262_v22  ;;  %v2268_v38 = vmul.f32 %v2266_v10, %v2266_v10 }
 0x29f   :  { %v2267_v39 = vsub.f32 %v2254_v33, %v2265_v37  ;;  %v2270_v47 = vsel %vm498_vm0, %v2268_v38, 0.0 }
 0x2a0   :  { %2271 = vadd.xlane.f32.xlu1 %v2270_v47 }
 0x2a1   :  { %v2269_v48 = vmul.f32 %v2267_v39, %v2267_v39 }
 0x2a3   :  { %v2273_v49 = vsel %vm498_vm0, %v2269_v48, 0.0 }
 0x2a4   :  { %2274 = vadd.xlane.f32.xlu1 %v2273_v49 }
 0x329   :  { %v2272_v50 = vpop.xlane.xlu1 %2271 }
 0x32a   :  { %v2276_v51 = vmul.f32 0.015625, %v2272_v50 }
 0x32c   :  { %v2278_v52 = vadd.f32 1e-05, %v2276_v51 }
 0x32d   :  { %v2275_v53 = vpop.xlane.xlu1 %2274 }
 0x32e   :  { %2814 = vrsqrt.f32 %v2278_v52  ;;  %v2277_v54 = vmul.f32 0.015625, %v2275_v53 }
 0x330   :  { %v2279_v55 = vadd.f32 1e-05, %v2277_v54 }
 0x332   :  { %2816 = vrsqrt.f32 %v2279_v55 }
 0x33b   :  { %v2815_v56 = vpop.eup %2814 }
 0x33c   :  { %v2282_v58 = vmul.f32 %v2815_v56, %v2266_v10 }
 0x33e   :  { %v2290_v61 = vmul.f32 %v2507_v57, %v2282_v58 }
 0x33f   :  { %v2817_v62 = vpop.eup %2816 }
 0x340   :  { %v2298_v0 = vadd.f32 %v2508_v60, %v2290_v61  ;;  %v2283_v4 = vmul.f32 %v2817_v62, %v2267_v39 }
 0x342   :  { %2300 = vst.msk [vmem:[%s3601_s7] sm:$0xff] %vm498_vm0, %v2298_v0  ;;  %v2291_v6 = vmul.f32 %v2507_v57, %v2283_v4 }
 0x344   :  { %v2299_v3 = vadd.f32 %v2508_v60, %v2291_v6 }
 0x346   :  { %2301 = vst.msk [vmem:[%s3601_s7 + $0x8] sm:$0xff] %vm498_vm0, %v2299_v3 }

</bundles_post_ra>
